<compile_context>
chip_gen: v7x
topology: tpu7x:2x2x1
jax: 0.10.0
libtpu: 0.0.40
codegen_flags: <defaults>
</compile_context>

<pallas_src>
import functools

import jax
import jax.numpy as jnp
from jax.experimental import pallas as pl
from jax.experimental.pallas import tpu as pltpu

LANE = 128            # channel padding target (lane-dense outputs)
TM_TARGET = 512       # row tile for the fused matmul kernel
TMP_TARGET = 256      # row tile for the maxpool kernel


def _round_up(x, m):
    return ((x + m - 1) // m) * m


def _pick_tile(dim, cands=(512, 256, 128)):
    for c in cands:
        if dim % c == 0:
            return c
    return dim


# ----------------------------------------------------------------------------
# Pallas kernels
# ----------------------------------------------------------------------------
def _fused_matmul_kernel(*refs, apply_act, has_res):
    """Tiled bf16 matmul on the MXU with f32 accumulator scratch.

    On the last K step: add folded-BN bias, optional residual, then SiLU
    (add-before-activation), and store bf16.
    """
    if has_res:
        x_ref, w_ref, b_ref, r_ref, o_ref, acc_ref = refs
    else:
        x_ref, w_ref, b_ref, o_ref, acc_ref = refs

    @pl.when(pl.program_id(2) == 0)
    def _():
        acc_ref[...] = jnp.zeros_like(acc_ref)

    acc_ref[...] += jnp.dot(x_ref[...], w_ref[...],
                            preferred_element_type=jnp.float32)

    @pl.when(pl.program_id(2) == pl.num_programs(2) - 1)
    def _():
        acc = acc_ref[...] + b_ref[...]              # folded BatchNorm bias
        if has_res:
            acc = acc + r_ref[...].astype(jnp.float32)   # residual (pre-act)
        if apply_act:
            acc = acc * jax.nn.sigmoid(acc)          # SiLU
        o_ref[...] = acc.astype(o_ref.dtype)


def _max4_kernel(a_ref, b_ref, c_ref, d_ref, o_ref):
    o_ref[...] = jnp.maximum(jnp.maximum(a_ref[...], b_ref[...]),
                             jnp.maximum(c_ref[...], d_ref[...]))


# ----------------------------------------------------------------------------
# Pallas wrappers
# ----------------------------------------------------------------------------
def fused_matmul_bias_act(x, w, bias, residual=None, apply_act=True):
    """x:(M,K) bf16, w:(K,N) bf16 (BN scale folded in), bias:(1,N) f32,
    residual:(M,N) bf16 or None  ->  (M,N) bf16."""
    M, K = x.shape
    K2, N = w.shape
    assert K == K2 and N % LANE == 0

    tm = TM_TARGET if M >= TM_TARGET else _round_up(M, 8)
    tn = _pick_tile(N)
    tk = _pick_tile(K)
    grid = (pl.cdiv(M, tm), N // tn, K // tk)

    has_res = residual is not None
    args = [x, w, bias]
    in_specs = [
        pl.BlockSpec((tm, tk), lambda i, j, k: (i, k)),
        pl.BlockSpec((tk, tn), lambda i, j, k: (k, j)),
        pl.BlockSpec((1, tn), lambda i, j, k: (0, j)),
    ]
    if has_res:
        args.append(residual)
        in_specs.append(pl.BlockSpec((tm, tn), lambda i, j, k: (i, j)))

    kernel = functools.partial(_fused_matmul_kernel,
                               apply_act=apply_act, has_res=has_res)
    return pl.pallas_call(
        kernel,
        out_shape=jax.ShapeDtypeStruct((M, N), jnp.bfloat16),
        grid=grid,
        in_specs=in_specs,
        out_specs=pl.BlockSpec((tm, tn), lambda i, j, k: (i, j)),
        scratch_shapes=[pltpu.VMEM((tm, tn), jnp.float32)],
        compiler_params=pltpu.CompilerParams(
            dimension_semantics=("parallel", "parallel", "arbitrary"),
            vmem_limit_bytes=48 * 1024 * 1024),
    )(*args)


def maxpool2x2(x_nhwc):
    """MaxPool2d(kernel_size=2, stride=2), row-tiled element-wise max kernel."""
    N, H, W, C = x_nhwc.shape
    Ho, Wo = H // 2, W // 2
    M = N * Ho * Wo
    # TODO(synk): the 4 taps are built with XLA strided slices; they could be
    #   fused into the kernel via shifted-window indexing to cut HBM traffic.
    taps = [x_nhwc[:, di:2 * Ho:2, dj:2 * Wo:2, :].reshape(M, C)
            for di in (0, 1) for dj in (0, 1)]
    tm = TMP_TARGET if M >= TMP_TARGET else _round_up(M, 8)
    out = pl.pallas_call(
        _max4_kernel,
        out_shape=jax.ShapeDtypeStruct((M, C), x_nhwc.dtype),
        grid=(pl.cdiv(M, tm),),
        in_specs=[pl.BlockSpec((tm, C), lambda i: (i, 0))] * 4,
        out_specs=pl.BlockSpec((tm, C), lambda i: (i, 0)),
        compiler_params=pltpu.CompilerParams(
            dimension_semantics=("parallel",),
            vmem_limit_bytes=48 * 1024 * 1024),
    )(*taps)
    return out.reshape(N, Ho, Wo, C)


# ----------------------------------------------------------------------------
# Glue: im2col + conv layer
# ----------------------------------------------------------------------------
def im2col(x_nhwc, kh, kw, stride, pad):
    N, H, W, C = x_nhwc.shape
    Ho = (H + 2 * pad - kh) // stride + 1
    Wo = (W + 2 * pad - kw) // stride + 1
    if kh == 1 and kw == 1 and stride == 1 and pad == 0:
        return x_nhwc.reshape(N * Ho * Wo, C), (N, Ho, Wo)
    xp = jnp.pad(x_nhwc, ((0, 0), (pad, pad), (pad, pad), (0, 0)))
    cols = []
    for di in range(kh):
        for dj in range(kw):
            cols.append(xp[:, di:di + stride * (Ho - 1) + 1:stride,
                           dj:dj + stride * (Wo - 1) + 1:stride, :])
    patches = jnp.stack(cols, axis=3)                    # (N,Ho,Wo,kh*kw,C) bf16
    return patches.reshape(N * Ho * Wo, kh * kw * C), (N, Ho, Wo)


def conv_bn_act(x_nhwc, p, kh, kw, stride, pad, apply_act=True, residual=None):
    patches, (N, Ho, Wo) = im2col(x_nhwc, kh, kw, stride, pad)
    cout_p = p["w"].shape[1]
    res_flat = (None if residual is None
                else residual.reshape(N * Ho * Wo, cout_p))
    out = fused_matmul_bias_act(patches, p["w"], p["bias"],
                                residual=res_flat, apply_act=apply_act)
    return out.reshape(N, Ho, Wo, cout_p)


# ----------------------------------------------------------------------------
# Parameter init (deterministic, synthetic) & model
# ----------------------------------------------------------------------------
def init_conv_bn(key, cin, cout, kh, kw, pad_cin=True):
    """Conv weights with BN scale folded in; padded to lane-dense channels."""
    cin_p = _round_up(cin, LANE) if pad_cin else cin
    cout_p = _round_up(cout, LANE)
    k1, k2, k3, k4, k5 = jax.random.split(key, 5)
    fan_in = kh * kw * cin
    w = jax.random.normal(k1, (kh, kw, cin, cout), jnp.float32) / jnp.sqrt(fan_in)
    gamma = 1.0 + 0.1 * jax.random.normal(k2, (cout,), jnp.float32)
    beta = 0.1 * jax.random.normal(k3, (cout,), jnp.float32)
    mean = 0.1 * jax.random.normal(k4, (cout,), jnp.float32)
    var = 1.0 + 0.1 * jnp.abs(jax.random.normal(k5, (cout,), jnp.float32))
    eps = 1e-5
    scale = gamma / jnp.sqrt(var + eps)
    bias = beta - mean * scale
    w = w * scale                                        # fold BN scale into W
    w = jnp.pad(w, ((0, 0), (0, 0), (0, cin_p - cin), (0, cout_p - cout)))
    bias = jnp.pad(bias, (0, cout_p - cout)).reshape(1, cout_p)
    return {"w": w.reshape(kh * kw * cin_p, cout_p).astype(jnp.bfloat16),
            "bias": bias.astype(jnp.float32)}


def init_resnet(key, in_channels, depths, dims, stem_filters):
    key, sk = jax.random.split(key)
    params = {"stem": init_conv_bn(sk, in_channels, stem_filters, 7, 7,
                                   pad_cin=False),
              "blocks": []}
    for i, depth in enumerate(depths):
        for j in range(depth):
            stride = 2 if j == 0 else 1
            if i == 0 and j == 0:
                cin = stem_filters
            elif j == 0 and i > 0:
                cin = dims[i - 1]
            else:
                cin = dims[i]
            cout = dims[i]
            key, k1, k2, k3 = jax.random.split(key, 4)
            blk = {
                "conv1": init_conv_bn(k1, cin, cout, 3, 3),
                "conv2": init_conv_bn(k2, cout, cout, 3, 3),
                "stride": stride,
                "shortcut": (init_conv_bn(k3, cin, cout, 1, 1)
                             if (stride != 1 or cin != cout) else None),
            }
            params["blocks"].append(blk)
    return params


def resblock_forward(x, blk):
    stride = blk["stride"]
    # shortcut path (downsampling_method='maxpooling')
    if blk["shortcut"] is None:
        sc = x
    else:
        sx = maxpool2x2(x) if stride != 1 else x
        sc = conv_bn_act(sx, blk["shortcut"], 1, 1, 1, 0, apply_act=False)
    # main path: 3x3(stride)->BN->SiLU -> 3x3->BN, then (+sc) -> SiLU fused
    h = conv_bn_act(x, blk["conv1"], 3, 3, stride, 1, apply_act=True)
    out = conv_bn_act(h, blk["conv2"], 3, 3, 1, 1, apply_act=True, residual=sc)
    return out


def resnet_forward(params, x_nchw, out_channels):
    x = jnp.transpose(x_nchw, (0, 2, 3, 1)).astype(jnp.bfloat16)  # NCHW->NHWC
    x = conv_bn_act(x, params["stem"], 7, 7, 2, 3, apply_act=True)
    for blk in params["blocks"]:
        x = resblock_forward(x, blk)
    x = x[..., :out_channels]                       # strip channel padding
    # build_head=False: return the feature map, PyTorch-style NCHW, f32
    return jnp.transpose(x, (0, 3, 1, 2)).astype(jnp.float32)


# ----------------------------------------------------------------------------
if __name__ == "__main__":
    key = jax.random.PRNGKey(0)
    kx, kp = jax.random.split(key)

    # small synthetic config consistent with Resnet.__init__
    in_channels, stem_filters = 3, 8
    depths, dims = [1, 1], [16, 32]

    x = jax.random.normal(kx, (2, in_channels, 16, 16), jnp.float32)
    params = init_resnet(kp, in_channels, depths, dims, stem_filters)

    fwd = jax.jit(lambda inp: resnet_forward(params, inp, dims[-1]))
    y = jax.block_until_ready(fwd(x))
    assert y.shape == (2, dims[-1], 2, 2), y.shape
    assert bool(jnp.all(jnp.isfinite(y)))
    print("KERNEL_OK")
</pallas_src>

<mosaic_0001>
module attributes {stable_mosaic.version = 11 : i64} {
  func.func @_max4_kernel(%arg0: i32, %arg1: memref<32x128xbf16, #tpu.memory_space<vmem>>, %arg2: memref<32x128xbf16, #tpu.memory_space<vmem>>, %arg3: memref<32x128xbf16, #tpu.memory_space<vmem>>, %arg4: memref<32x128xbf16, #tpu.memory_space<vmem>>, %arg5: memref<32x128xbf16, #tpu.memory_space<vmem>>) attributes {dimension_semantics = [#tpu.dimension_semantics<parallel>], iteration_bounds = array<i64: 1>, scalar_prefetch = 0 : i64, scratch_operands = 0 : i64, tpu.core_type = #tpu.core_type<tc>, window_params = [{transform_indices = @transform_0, window_bounds = array<i64: 32, 128>}, {transform_indices = @transform_1, window_bounds = array<i64: 32, 128>}, {transform_indices = @transform_2, window_bounds = array<i64: 32, 128>}, {transform_indices = @transform_3, window_bounds = array<i64: 32, 128>}, {transform_indices = @transform_4, window_bounds = array<i64: 32, 128>}]} {
    %c0 = arith.constant 0 : index
    %c0_0 = arith.constant 0 : index
    %0 = vector.load %arg1[%c0, %c0_0] : memref<32x128xbf16, #tpu.memory_space<vmem>>, vector<32x128xbf16>
    %c0_1 = arith.constant 0 : index
    %c0_2 = arith.constant 0 : index
    %1 = vector.load %arg2[%c0_1, %c0_2] : memref<32x128xbf16, #tpu.memory_space<vmem>>, vector<32x128xbf16>
    %2 = arith.maximumf %0, %1 : vector<32x128xbf16>
    %c0_3 = arith.constant 0 : index
    %c0_4 = arith.constant 0 : index
    %3 = vector.load %arg3[%c0_3, %c0_4] : memref<32x128xbf16, #tpu.memory_space<vmem>>, vector<32x128xbf16>
    %c0_5 = arith.constant 0 : index
    %c0_6 = arith.constant 0 : index
    %4 = vector.load %arg4[%c0_5, %c0_6] : memref<32x128xbf16, #tpu.memory_space<vmem>>, vector<32x128xbf16>
    %5 = arith.maximumf %3, %4 : vector<32x128xbf16>
    %6 = arith.maximumf %2, %5 : vector<32x128xbf16>
    %c0_7 = arith.constant 0 : index
    %c0_8 = arith.constant 0 : index
    %7 = vector.load %arg5[%c0_7, %c0_8] : memref<32x128xbf16, #tpu.memory_space<vmem>>, vector<32x128xbf16>
    tpu.vector_store %arg5[%c0_7, %c0_8], %6 {strides = array<i32>} : memref<32x128xbf16, #tpu.memory_space<vmem>>, vector<32x128xbf16>,
    return
  }
  func.func @transform_0(%arg0: i32) -> (i32, i32) {
    %c0_i32 = arith.constant 0 : i32
    %c0_i32_0 = arith.constant 0 : i32
    return %arg0, %c0_i32 : i32, i32
  }
  func.func @transform_1(%arg0: i32) -> (i32, i32) {
    %c0_i32 = arith.constant 0 : i32
    %c0_i32_0 = arith.constant 0 : i32
    return %arg0, %c0_i32 : i32, i32
  }
  func.func @transform_2(%arg0: i32) -> (i32, i32) {
    %c0_i32 = arith.constant 0 : i32
    %c0_i32_0 = arith.constant 0 : i32
    return %arg0, %c0_i32 : i32, i32
  }
  func.func @transform_3(%arg0: i32) -> (i32, i32) {
    %c0_i32 = arith.constant 0 : i32
    %c0_i32_0 = arith.constant 0 : i32
    return %arg0, %c0_i32 : i32, i32
  }
  func.func @transform_4(%arg0: i32) -> (i32, i32) {
    %c0_i32 = arith.constant 0 : i32
    %c0_i32_0 = arith.constant 0 : i32
    return %arg0, %c0_i32 : i32, i32
  }
}

module attributes {stable_mosaic.version = 11 : i64} {
  func.func @_fused_matmul_kernel(%arg0: i32, %arg1: i32, %arg2: i32, %arg3: memref<128x147xbf16, #tpu.memory_space<vmem>>, %arg4: memref<147x128xbf16, #tpu.memory_space<vmem>>, %arg5: memref<1x128xf32, #tpu.memory_space<vmem>>, %arg6: memref<128x128xbf16, #tpu.memory_space<vmem>>, %arg7: memref<128x128xf32, #tpu.memory_space<vmem>>) attributes {dimension_semantics = [#tpu.dimension_semantics<parallel>, #tpu.dimension_semantics<parallel>, #tpu.dimension_semantics<arbitrary>], iteration_bounds = array<i64: 1, 1, 1>, scalar_prefetch = 0 : i64, scratch_operands = 1 : i64, tpu.core_type = #tpu.core_type<tc>, window_params = [{transform_indices = @transform_0, window_bounds = array<i64: 128, 147>}, {transform_indices = @transform_1, window_bounds = array<i64: 147, 128>}, {transform_indices = @transform_2, window_bounds = array<i64: 1, 128>}, {transform_indices = @transform_3, window_bounds = array<i64: 128, 128>}]} {
    %c0_i32 = arith.constant 0 : i32
    %0 = arith.cmpi eq, %arg2, %c0_i32 : i32
    %1 = arith.extui %0 : i1 to i32
    %c0_i32_0 = arith.constant 0 : i32
    %2 = arith.cmpi ne, %1, %c0_i32_0 : i32
    scf.if %2 {
      %cst_10 = arith.constant 0.000000e+00 : f32
      %12 = vector.broadcast %cst_10 : f32 to vector<128x128xf32>
      %c0_11 = arith.constant 0 : index
      %c0_12 = arith.constant 0 : index
      %13 = vector.load %arg7[%c0_11, %c0_12] : memref<128x128xf32, #tpu.memory_space<vmem>>, vector<128x128xf32>
      tpu.vector_store %arg7[%c0_11, %c0_12], %12 {strides = array<i32>} : memref<128x128xf32, #tpu.memory_space<vmem>>, vector<128x128xf32>,
    } else {
    }
    %c0 = arith.constant 0 : index
    %c0_1 = arith.constant 0 : index
    %3 = vector.load %arg7[%c0, %c0_1] : memref<128x128xf32, #tpu.memory_space<vmem>>, vector<128x128xf32>
    %c0_2 = arith.constant 0 : index
    %c0_3 = arith.constant 0 : index
    %4 = vector.load %arg3[%c0_2, %c0_3] : memref<128x147xbf16, #tpu.memory_space<vmem>>, vector<128x147xbf16>
    %c0_4 = arith.constant 0 : index
    %c0_5 = arith.constant 0 : index
    %5 = vector.load %arg4[%c0_4, %c0_5] : memref<147x128xbf16, #tpu.memory_space<vmem>>, vector<147x128xbf16>
    %cst = arith.constant dense<0.000000e+00> : vector<128x128xf32>
    %6 = tpu.matmul %4, %5, %cst {dimension_numbers = #tpu.dot_dimension_numbers<[1], [0], [0], [1], [0, 0, 1, 1], [], []>} : vector<128x147xbf16>, vector<147x128xbf16>, vector<128x128xf32> -> vector<128x128xf32>
    %7 = arith.addf %3, %6 : vector<128x128xf32>
    %c0_6 = arith.constant 0 : index
    %c0_7 = arith.constant 0 : index
    %8 = vector.load %arg7[%c0_6, %c0_7] : memref<128x128xf32, #tpu.memory_space<vmem>>, vector<128x128xf32>
    tpu.vector_store %arg7[%c0_6, %c0_7], %7 {strides = array<i32>} : memref<128x128xf32, #tpu.memory_space<vmem>>, vector<128x128xf32>,
    %c0_i32_8 = arith.constant 0 : i32
    %9 = arith.cmpi eq, %arg2, %c0_i32_8 : i32
    %10 = arith.extui %9 : i1 to i32
    %c0_i32_9 = arith.constant 0 : i32
    %11 = arith.cmpi ne, %10, %c0_i32_9 : i32
    scf.if %11 {
      %c0_10 = arith.constant 0 : index
      %c0_11 = arith.constant 0 : index
      %12 = vector.load %arg7[%c0_10, %c0_11] : memref<128x128xf32, #tpu.memory_space<vmem>>, vector<128x128xf32>
      %c0_12 = arith.constant 0 : index
      %c0_13 = arith.constant 0 : index
      %13 = vector.load %arg5[%c0_12, %c0_13] : memref<1x128xf32, #tpu.memory_space<vmem>>, vector<1x128xf32>
      %14 = vector.broadcast %13 : vector<1x128xf32> to vector<128x128xf32>
      %15 = arith.addf %12, %14 : vector<128x128xf32>
      %16 = arith.negf %15 : vector<128x128xf32>
      %17 = math.exp %16 : vector<128x128xf32>
      %cst_14 = arith.constant 1.000000e+00 : f32
      %18 = vector.broadcast %cst_14 : f32 to vector<128x128xf32>
      %19 = arith.addf %18, %17 : vector<128x128xf32>
      %20 = arith.divf %18, %19 : vector<128x128xf32>
      %21 = arith.mulf %15, %20 : vector<128x128xf32>
      %22 = arith.truncf %21 : vector<128x128xf32> to vector<128x128xbf16>
      %c0_15 = arith.constant 0 : index
      %c0_16 = arith.constant 0 : index
      %23 = vector.load %arg6[%c0_15, %c0_16] : memref<128x128xbf16, #tpu.memory_space<vmem>>, vector<128x128xbf16>
      tpu.vector_store %arg6[%c0_15, %c0_16], %22 {strides = array<i32>} : memref<128x128xbf16, #tpu.memory_space<vmem>>, vector<128x128xbf16>,
    } else {
    }
    return
  }
  func.func @transform_0(%arg0: i32, %arg1: i32, %arg2: i32) -> (i32, i32) {
    %c0_i32 = arith.constant 0 : i32
    return %arg0, %arg2 : i32, i32
  }
  func.func @transform_1(%arg0: i32, %arg1: i32, %arg2: i32) -> (i32, i32) {
    %c0_i32 = arith.constant 0 : i32
    return %arg2, %arg1 : i32, i32
  }
  func.func @transform_2(%arg0: i32, %arg1: i32, %arg2: i32) -> (i32, i32) {
    %c0_i32 = arith.constant 0 : i32
    %c0_i32_0 = arith.constant 0 : i32
    return %c0_i32, %arg1 : i32, i32
  }
  func.func @transform_3(%arg0: i32, %arg1: i32, %arg2: i32) -> (i32, i32) {
    %c0_i32 = arith.constant 0 : i32
    return %arg0, %arg1 : i32, i32
  }
}

module attributes {stable_mosaic.version = 11 : i64} {
  func.func @_fused_matmul_kernel(%arg0: i32, %arg1: i32, %arg2: i32, %arg3: memref<32x128xbf16, #tpu.memory_space<vmem>>, %arg4: memref<128x128xbf16, #tpu.memory_space<vmem>>, %arg5: memref<1x128xf32, #tpu.memory_space<vmem>>, %arg6: memref<32x128xbf16, #tpu.memory_space<vmem>>, %arg7: memref<32x128xf32, #tpu.memory_space<vmem>>) attributes {dimension_semantics = [#tpu.dimension_semantics<parallel>, #tpu.dimension_semantics<parallel>, #tpu.dimension_semantics<arbitrary>], iteration_bounds = array<i64: 1, 1, 1>, scalar_prefetch = 0 : i64, scratch_operands = 1 : i64, tpu.core_type = #tpu.core_type<tc>, window_params = [{transform_indices = @transform_0, window_bounds = array<i64: 32, 128>}, {transform_indices = @transform_1, window_bounds = array<i64: 128, 128>}, {transform_indices = @transform_2, window_bounds = array<i64: 1, 128>}, {transform_indices = @transform_3, window_bounds = array<i64: 32, 128>}]} {
    %c0_i32 = arith.constant 0 : i32
    %0 = arith.cmpi eq, %arg2, %c0_i32 : i32
    %1 = arith.extui %0 : i1 to i32
    %c0_i32_0 = arith.constant 0 : i32
    %2 = arith.cmpi ne, %1, %c0_i32_0 : i32
    scf.if %2 {
      %cst_10 = arith.constant 0.000000e+00 : f32
      %12 = vector.broadcast %cst_10 : f32 to vector<32x128xf32>
      %c0_11 = arith.constant 0 : index
      %c0_12 = arith.constant 0 : index
      %13 = vector.load %arg7[%c0_11, %c0_12] : memref<32x128xf32, #tpu.memory_space<vmem>>, vector<32x128xf32>
      tpu.vector_store %arg7[%c0_11, %c0_12], %12 {strides = array<i32>} : memref<32x128xf32, #tpu.memory_space<vmem>>, vector<32x128xf32>,
    } else {
    }
    %c0 = arith.constant 0 : index
    %c0_1 = arith.constant 0 : index
    %3 = vector.load %arg7[%c0, %c0_1] : memref<32x128xf32, #tpu.memory_space<vmem>>, vector<32x128xf32>
    %c0_2 = arith.constant 0 : index
    %c0_3 = arith.constant 0 : index
    %4 = vector.load %arg3[%c0_2, %c0_3] : memref<32x128xbf16, #tpu.memory_space<vmem>>, vector<32x128xbf16>
    %c0_4 = arith.constant 0 : index
    %c0_5 = arith.constant 0 : index
    %5 = vector.load %arg4[%c0_4, %c0_5] : memref<128x128xbf16, #tpu.memory_space<vmem>>, vector<128x128xbf16>
    %cst = arith.constant dense<0.000000e+00> : vector<32x128xf32>
    %6 = tpu.matmul %4, %5, %cst {dimension_numbers = #tpu.dot_dimension_numbers<[1], [0], [0], [1], [0, 0, 1, 1], [], []>} : vector<32x128xbf16>, vector<128x128xbf16>, vector<32x128xf32> -> vector<32x128xf32>
    %7 = arith.addf %3, %6 : vector<32x128xf32>
    %c0_6 = arith.constant 0 : index
    %c0_7 = arith.constant 0 : index
    %8 = vector.load %arg7[%c0_6, %c0_7] : memref<32x128xf32, #tpu.memory_space<vmem>>, vector<32x128xf32>
    tpu.vector_store %arg7[%c0_6, %c0_7], %7 {strides = array<i32>} : memref<32x128xf32, #tpu.memory_space<vmem>>, vector<32x128xf32>,
    %c0_i32_8 = arith.constant 0 : i32
    %9 = arith.cmpi eq, %arg2, %c0_i32_8 : i32
    %10 = arith.extui %9 : i1 to i32
    %c0_i32_9 = arith.constant 0 : i32
    %11 = arith.cmpi ne, %10, %c0_i32_9 : i32
    scf.if %11 {
      %c0_10 = arith.constant 0 : index
      %c0_11 = arith.constant 0 : index
      %12 = vector.load %arg7[%c0_10, %c0_11] : memref<32x128xf32, #tpu.memory_space<vmem>>, vector<32x128xf32>
      %c0_12 = arith.constant 0 : index
      %c0_13 = arith.constant 0 : index
      %13 = vector.load %arg5[%c0_12, %c0_13] : memref<1x128xf32, #tpu.memory_space<vmem>>, vector<1x128xf32>
      %14 = vector.broadcast %13 : vector<1x128xf32> to vector<32x128xf32>
      %15 = arith.addf %12, %14 : vector<32x128xf32>
      %16 = arith.truncf %15 : vector<32x128xf32> to vector<32x128xbf16>
      %c0_14 = arith.constant 0 : index
      %c0_15 = arith.constant 0 : index
      %17 = vector.load %arg6[%c0_14, %c0_15] : memref<32x128xbf16, #tpu.memory_space<vmem>>, vector<32x128xbf16>
      tpu.vector_store %arg6[%c0_14, %c0_15], %16 {strides = array<i32>} : memref<32x128xbf16, #tpu.memory_space<vmem>>, vector<32x128xbf16>,
    } else {
    }
    return
  }
  func.func @transform_0(%arg0: i32, %arg1: i32, %arg2: i32) -> (i32, i32) {
    %c0_i32 = arith.constant 0 : i32
    return %arg0, %arg2 : i32, i32
  }
  func.func @transform_1(%arg0: i32, %arg1: i32, %arg2: i32) -> (i32, i32) {
    %c0_i32 = arith.constant 0 : i32
    return %arg2, %arg1 : i32, i32
  }
  func.func @transform_2(%arg0: i32, %arg1: i32, %arg2: i32) -> (i32, i32) {
    %c0_i32 = arith.constant 0 : i32
    %c0_i32_0 = arith.constant 0 : i32
    return %c0_i32, %arg1 : i32, i32
  }
  func.func @transform_3(%arg0: i32, %arg1: i32, %arg2: i32) -> (i32, i32) {
    %c0_i32 = arith.constant 0 : i32
    return %arg0, %arg1 : i32, i32
  }
}

module attributes {stable_mosaic.version = 11 : i64} {
  func.func @_fused_matmul_kernel(%arg0: i32, %arg1: i32, %arg2: i32, %arg3: memref<32x128xbf16, #tpu.memory_space<vmem>>, %arg4: memref<128x128xbf16, #tpu.memory_space<vmem>>, %arg5: memref<1x128xf32, #tpu.memory_space<vmem>>, %arg6: memref<32x128xbf16, #tpu.memory_space<vmem>>, %arg7: memref<32x128xf32, #tpu.memory_space<vmem>>) attributes {dimension_semantics = [#tpu.dimension_semantics<parallel>, #tpu.dimension_semantics<parallel>, #tpu.dimension_semantics<arbitrary>], iteration_bounds = array<i64: 1, 1, 9>, scalar_prefetch = 0 : i64, scratch_operands = 1 : i64, tpu.core_type = #tpu.core_type<tc>, window_params = [{transform_indices = @transform_0, window_bounds = array<i64: 32, 128>}, {transform_indices = @transform_1, window_bounds = array<i64: 128, 128>}, {transform_indices = @transform_2, window_bounds = array<i64: 1, 128>}, {transform_indices = @transform_3, window_bounds = array<i64: 32, 128>}]} {
    %c0_i32 = arith.constant 0 : i32
    %0 = arith.cmpi eq, %arg2, %c0_i32 : i32
    %1 = arith.extui %0 : i1 to i32
    %c0_i32_0 = arith.constant 0 : i32
    %2 = arith.cmpi ne, %1, %c0_i32_0 : i32
    scf.if %2 {
      %cst_9 = arith.constant 0.000000e+00 : f32
      %12 = vector.broadcast %cst_9 : f32 to vector<32x128xf32>
      %c0_10 = arith.constant 0 : index
      %c0_11 = arith.constant 0 : index
      %13 = vector.load %arg7[%c0_10, %c0_11] : memref<32x128xf32, #tpu.memory_space<vmem>>, vector<32x128xf32>
      tpu.vector_store %arg7[%c0_10, %c0_11], %12 {strides = array<i32>} : memref<32x128xf32, #tpu.memory_space<vmem>>, vector<32x128xf32>,
    } else {
    }
    %c0 = arith.constant 0 : index
    %c0_1 = arith.constant 0 : index
    %3 = vector.load %arg7[%c0, %c0_1] : memref<32x128xf32, #tpu.memory_space<vmem>>, vector<32x128xf32>
    %c0_2 = arith.constant 0 : index
    %c0_3 = arith.constant 0 : index
    %4 = vector.load %arg3[%c0_2, %c0_3] : memref<32x128xbf16, #tpu.memory_space<vmem>>, vector<32x128xbf16>
    %c0_4 = arith.constant 0 : index
    %c0_5 = arith.constant 0 : index
    %5 = vector.load %arg4[%c0_4, %c0_5] : memref<128x128xbf16, #tpu.memory_space<vmem>>, vector<128x128xbf16>
    %cst = arith.constant dense<0.000000e+00> : vector<32x128xf32>
    %6 = tpu.matmul %4, %5, %cst {dimension_numbers = #tpu.dot_dimension_numbers<[1], [0], [0], [1], [0, 0, 1, 1], [], []>} : vector<32x128xbf16>, vector<128x128xbf16>, vector<32x128xf32> -> vector<32x128xf32>
    %7 = arith.addf %3, %6 : vector<32x128xf32>
    %c0_6 = arith.constant 0 : index
    %c0_7 = arith.constant 0 : index
    %8 = vector.load %arg7[%c0_6, %c0_7] : memref<32x128xf32, #tpu.memory_space<vmem>>, vector<32x128xf32>
    tpu.vector_store %arg7[%c0_6, %c0_7], %7 {strides = array<i32>} : memref<32x128xf32, #tpu.memory_space<vmem>>, vector<32x128xf32>,
    %c8_i32 = arith.constant 8 : i32
    %9 = arith.cmpi eq, %arg2, %c8_i32 : i32
    %10 = arith.extui %9 : i1 to i32
    %c0_i32_8 = arith.constant 0 : i32
    %11 = arith.cmpi ne, %10, %c0_i32_8 : i32
    scf.if %11 {
      %c0_9 = arith.constant 0 : index
      %c0_10 = arith.constant 0 : index
      %12 = vector.load %arg7[%c0_9, %c0_10] : memref<32x128xf32, #tpu.memory_space<vmem>>, vector<32x128xf32>
      %c0_11 = arith.constant 0 : index
      %c0_12 = arith.constant 0 : index
      %13 = vector.load %arg5[%c0_11, %c0_12] : memref<1x128xf32, #tpu.memory_space<vmem>>, vector<1x128xf32>
      %14 = vector.broadcast %13 : vector<1x128xf32> to vector<32x128xf32>
      %15 = arith.addf %12, %14 : vector<32x128xf32>
      %16 = arith.negf %15 : vector<32x128xf32>
      %17 = math.exp %16 : vector<32x128xf32>
      %cst_13 = arith.constant 1.000000e+00 : f32
      %18 = vector.broadcast %cst_13 : f32 to vector<32x128xf32>
      %19 = arith.addf %18, %17 : vector<32x128xf32>
      %20 = arith.divf %18, %19 : vector<32x128xf32>
      %21 = arith.mulf %15, %20 : vector<32x128xf32>
      %22 = arith.truncf %21 : vector<32x128xf32> to vector<32x128xbf16>
      %c0_14 = arith.constant 0 : index
      %c0_15 = arith.constant 0 : index
      %23 = vector.load %arg6[%c0_14, %c0_15] : memref<32x128xbf16, #tpu.memory_space<vmem>>, vector<32x128xbf16>
      tpu.vector_store %arg6[%c0_14, %c0_15], %22 {strides = array<i32>} : memref<32x128xbf16, #tpu.memory_space<vmem>>, vector<32x128xbf16>,
    } else {
    }
    return
  }
  func.func @transform_0(%arg0: i32, %arg1: i32, %arg2: i32) -> (i32, i32) {
    %c0_i32 = arith.constant 0 : i32
    return %arg0, %arg2 : i32, i32
  }
  func.func @transform_1(%arg0: i32, %arg1: i32, %arg2: i32) -> (i32, i32) {
    %c0_i32 = arith.constant 0 : i32
    return %arg2, %arg1 : i32, i32
  }
  func.func @transform_2(%arg0: i32, %arg1: i32, %arg2: i32) -> (i32, i32) {
    %c0_i32 = arith.constant 0 : i32
    %c0_i32_0 = arith.constant 0 : i32
    return %c0_i32, %arg1 : i32, i32
  }
  func.func @transform_3(%arg0: i32, %arg1: i32, %arg2: i32) -> (i32, i32) {
    %c0_i32 = arith.constant 0 : i32
    return %arg0, %arg1 : i32, i32
  }
}

module attributes {stable_mosaic.version = 11 : i64} {
  func.func @_fused_matmul_kernel(%arg0: i32, %arg1: i32, %arg2: i32, %arg3: memref<32x128xbf16, #tpu.memory_space<vmem>>, %arg4: memref<128x128xbf16, #tpu.memory_space<vmem>>, %arg5: memref<1x128xf32, #tpu.memory_space<vmem>>, %arg6: memref<32x128xbf16, #tpu.memory_space<vmem>>, %arg7: memref<32x128xbf16, #tpu.memory_space<vmem>>, %arg8: memref<32x128xf32, #tpu.memory_space<vmem>>) attributes {dimension_semantics = [#tpu.dimension_semantics<parallel>, #tpu.dimension_semantics<parallel>, #tpu.dimension_semantics<arbitrary>], iteration_bounds = array<i64: 1, 1, 9>, scalar_prefetch = 0 : i64, scratch_operands = 1 : i64, tpu.core_type = #tpu.core_type<tc>, window_params = [{transform_indices = @transform_0, window_bounds = array<i64: 32, 128>}, {transform_indices = @transform_1, window_bounds = array<i64: 128, 128>}, {transform_indices = @transform_2, window_bounds = array<i64: 1, 128>}, {transform_indices = @transform_3, window_bounds = array<i64: 32, 128>}, {transform_indices = @transform_4, window_bounds = array<i64: 32, 128>}]} {
    %c0_i32 = arith.constant 0 : i32
    %0 = arith.cmpi eq, %arg2, %c0_i32 : i32
    %1 = arith.extui %0 : i1 to i32
    %c0_i32_0 = arith.constant 0 : i32
    %2 = arith.cmpi ne, %1, %c0_i32_0 : i32
    scf.if %2 {
      %cst_9 = arith.constant 0.000000e+00 : f32
      %12 = vector.broadcast %cst_9 : f32 to vector<32x128xf32>
      %c0_10 = arith.constant 0 : index
      %c0_11 = arith.constant 0 : index
      %13 = vector.load %arg8[%c0_10, %c0_11] : memref<32x128xf32, #tpu.memory_space<vmem>>, vector<32x128xf32>
      tpu.vector_store %arg8[%c0_10, %c0_11], %12 {strides = array<i32>} : memref<32x128xf32, #tpu.memory_space<vmem>>, vector<32x128xf32>,
    } else {
    }
    %c0 = arith.constant 0 : index
    %c0_1 = arith.constant 0 : index
    %3 = vector.load %arg8[%c0, %c0_1] : memref<32x128xf32, #tpu.memory_space<vmem>>, vector<32x128xf32>
    %c0_2 = arith.constant 0 : index
    %c0_3 = arith.constant 0 : index
    %4 = vector.load %arg3[%c0_2, %c0_3] : memref<32x128xbf16, #tpu.memory_space<vmem>>, vector<32x128xbf16>
    %c0_4 = arith.constant 0 : index
    %c0_5 = arith.constant 0 : index
    %5 = vector.load %arg4[%c0_4, %c0_5] : memref<128x128xbf16, #tpu.memory_space<vmem>>, vector<128x128xbf16>
    %cst = arith.constant dense<0.000000e+00> : vector<32x128xf32>
    %6 = tpu.matmul %4, %5, %cst {dimension_numbers = #tpu.dot_dimension_numbers<[1], [0], [0], [1], [0, 0, 1, 1], [], []>} : vector<32x128xbf16>, vector<128x128xbf16>, vector<32x128xf32> -> vector<32x128xf32>
    %7 = arith.addf %3, %6 : vector<32x128xf32>
    %c0_6 = arith.constant 0 : index
    %c0_7 = arith.constant 0 : index
    %8 = vector.load %arg8[%c0_6, %c0_7] : memref<32x128xf32, #tpu.memory_space<vmem>>, vector<32x128xf32>
    tpu.vector_store %arg8[%c0_6, %c0_7], %7 {strides = array<i32>} : memref<32x128xf32, #tpu.memory_space<vmem>>, vector<32x128xf32>,
    %c8_i32 = arith.constant 8 : i32
    %9 = arith.cmpi eq, %arg2, %c8_i32 : i32
    %10 = arith.extui %9 : i1 to i32
    %c0_i32_8 = arith.constant 0 : i32
    %11 = arith.cmpi ne, %10, %c0_i32_8 : i32
    scf.if %11 {
      %c0_9 = arith.constant 0 : index
      %c0_10 = arith.constant 0 : index
      %12 = vector.load %arg8[%c0_9, %c0_10] : memref<32x128xf32, #tpu.memory_space<vmem>>, vector<32x128xf32>
      %c0_11 = arith.constant 0 : index
      %c0_12 = arith.constant 0 : index
      %13 = vector.load %arg5[%c0_11, %c0_12] : memref<1x128xf32, #tpu.memory_space<vmem>>, vector<1x128xf32>
      %14 = vector.broadcast %13 : vector<1x128xf32> to vector<32x128xf32>
      %15 = arith.addf %12, %14 : vector<32x128xf32>
      %c0_13 = arith.constant 0 : index
      %c0_14 = arith.constant 0 : index
      %16 = vector.load %arg6[%c0_13, %c0_14] : memref<32x128xbf16, #tpu.memory_space<vmem>>, vector<32x128xbf16>
      %17 = arith.extf %16 : vector<32x128xbf16> to vector<32x128xf32>
      %18 = arith.addf %15, %17 : vector<32x128xf32>
      %19 = arith.negf %18 : vector<32x128xf32>
      %20 = math.exp %19 : vector<32x128xf32>
      %cst_15 = arith.constant 1.000000e+00 : f32
      %21 = vector.broadcast %cst_15 : f32 to vector<32x128xf32>
      %22 = arith.addf %21, %20 : vector<32x128xf32>
      %23 = arith.divf %21, %22 : vector<32x128xf32>
      %24 = arith.mulf %18, %23 : vector<32x128xf32>
      %25 = arith.truncf %24 : vector<32x128xf32> to vector<32x128xbf16>
      %c0_16 = arith.constant 0 : index
      %c0_17 = arith.constant 0 : index
      %26 = vector.load %arg7[%c0_16, %c0_17] : memref<32x128xbf16, #tpu.memory_space<vmem>>, vector<32x128xbf16>
      tpu.vector_store %arg7[%c0_16, %c0_17], %25 {strides = array<i32>} : memref<32x128xbf16, #tpu.memory_space<vmem>>, vector<32x128xbf16>,
    } else {
    }
    return
  }
  func.func @transform_0(%arg0: i32, %arg1: i32, %arg2: i32) -> (i32, i32) {
    %c0_i32 = arith.constant 0 : i32
    return %arg0, %arg2 : i32, i32
  }
  func.func @transform_1(%arg0: i32, %arg1: i32, %arg2: i32) -> (i32, i32) {
    %c0_i32 = arith.constant 0 : i32
    return %arg2, %arg1 : i32, i32
  }
  func.func @transform_2(%arg0: i32, %arg1: i32, %arg2: i32) -> (i32, i32) {
    %c0_i32 = arith.constant 0 : i32
    %c0_i32_0 = arith.constant 0 : i32
    return %c0_i32, %arg1 : i32, i32
  }
  func.func @transform_3(%arg0: i32, %arg1: i32, %arg2: i32) -> (i32, i32) {
    %c0_i32 = arith.constant 0 : i32
    return %arg0, %arg1 : i32, i32
  }
  func.func @transform_4(%arg0: i32, %arg1: i32, %arg2: i32) -> (i32, i32) {
    %c0_i32 = arith.constant 0 : i32
    return %arg0, %arg1 : i32, i32
  }
}

module attributes {stable_mosaic.version = 11 : i64} {
  func.func @_fused_matmul_kernel(%arg0: i32, %arg1: i32, %arg2: i32, %arg3: memref<8x128xbf16, #tpu.memory_space<vmem>>, %arg4: memref<128x128xbf16, #tpu.memory_space<vmem>>, %arg5: memref<1x128xf32, #tpu.memory_space<vmem>>, %arg6: memref<8x128xbf16, #tpu.memory_space<vmem>>, %arg7: memref<8x128xf32, #tpu.memory_space<vmem>>) attributes {dimension_semantics = [#tpu.dimension_semantics<parallel>, #tpu.dimension_semantics<parallel>, #tpu.dimension_semantics<arbitrary>], iteration_bounds = array<i64: 1, 1, 1>, scalar_prefetch = 0 : i64, scratch_operands = 1 : i64, tpu.core_type = #tpu.core_type<tc>, window_params = [{transform_indices = @transform_0, window_bounds = array<i64: 8, 128>}, {transform_indices = @transform_1, window_bounds = array<i64: 128, 128>}, {transform_indices = @transform_2, window_bounds = array<i64: 1, 128>}, {transform_indices = @transform_3, window_bounds = array<i64: 8, 128>}]} {
    %c0_i32 = arith.constant 0 : i32
    %0 = arith.cmpi eq, %arg2, %c0_i32 : i32
    %1 = arith.extui %0 : i1 to i32
    %c0_i32_0 = arith.constant 0 : i32
    %2 = arith.cmpi ne, %1, %c0_i32_0 : i32
    scf.if %2 {
      %cst_10 = arith.constant 0.000000e+00 : f32
      %12 = vector.broadcast %cst_10 : f32 to vector<8x128xf32>
      %c0_11 = arith.constant 0 : index
      %c0_12 = arith.constant 0 : index
      %13 = vector.load %arg7[%c0_11, %c0_12] : memref<8x128xf32, #tpu.memory_space<vmem>>, vector<8x128xf32>
      tpu.vector_store %arg7[%c0_11, %c0_12], %12 {strides = array<i32>} : memref<8x128xf32, #tpu.memory_space<vmem>>, vector<8x128xf32>,
    } else {
    }
    %c0 = arith.constant 0 : index
    %c0_1 = arith.constant 0 : index
    %3 = vector.load %arg7[%c0, %c0_1] : memref<8x128xf32, #tpu.memory_space<vmem>>, vector<8x128xf32>
    %c0_2 = arith.constant 0 : index
    %c0_3 = arith.constant 0 : index
    %4 = vector.load %arg3[%c0_2, %c0_3] : memref<8x128xbf16, #tpu.memory_space<vmem>>, vector<8x128xbf16>
    %c0_4 = arith.constant 0 : index
    %c0_5 = arith.constant 0 : index
    %5 = vector.load %arg4[%c0_4, %c0_5] : memref<128x128xbf16, #tpu.memory_space<vmem>>, vector<128x128xbf16>
    %cst = arith.constant dense<0.000000e+00> : vector<8x128xf32>
    %6 = tpu.matmul %4, %5, %cst {dimension_numbers = #tpu.dot_dimension_numbers<[1], [0], [0], [1], [0, 0, 1, 1], [], []>} : vector<8x128xbf16>, vector<128x128xbf16>, vector<8x128xf32> -> vector<8x128xf32>
    %7 = arith.addf %3, %6 : vector<8x128xf32>
    %c0_6 = arith.constant 0 : index
    %c0_7 = arith.constant 0 : index
    %8 = vector.load %arg7[%c0_6, %c0_7] : memref<8x128xf32, #tpu.memory_space<vmem>>, vector<8x128xf32>
    tpu.vector_store %arg7[%c0_6, %c0_7], %7 {strides = array<i32>} : memref<8x128xf32, #tpu.memory_space<vmem>>, vector<8x128xf32>,
    %c0_i32_8 = arith.constant 0 : i32
    %9 = arith.cmpi eq, %arg2, %c0_i32_8 : i32
    %10 = arith.extui %9 : i1 to i32
    %c0_i32_9 = arith.constant 0 : i32
    %11 = arith.cmpi ne, %10, %c0_i32_9 : i32
    scf.if %11 {
      %c0_10 = arith.constant 0 : index
      %c0_11 = arith.constant 0 : index
      %12 = vector.load %arg7[%c0_10, %c0_11] : memref<8x128xf32, #tpu.memory_space<vmem>>, vector<8x128xf32>
      %c0_12 = arith.constant 0 : index
      %c0_13 = arith.constant 0 : index
      %13 = vector.load %arg5[%c0_12, %c0_13] : memref<1x128xf32, #tpu.memory_space<vmem>>, vector<1x128xf32>
      %14 = vector.broadcast %13 : vector<1x128xf32> to vector<8x128xf32>
      %15 = arith.addf %12, %14 : vector<8x128xf32>
      %16 = arith.truncf %15 : vector<8x128xf32> to vector<8x128xbf16>
      %c0_14 = arith.constant 0 : index
      %c0_15 = arith.constant 0 : index
      %17 = vector.load %arg6[%c0_14, %c0_15] : memref<8x128xbf16, #tpu.memory_space<vmem>>, vector<8x128xbf16>
      tpu.vector_store %arg6[%c0_14, %c0_15], %16 {strides = array<i32>} : memref<8x128xbf16, #tpu.memory_space<vmem>>, vector<8x128xbf16>,
    } else {
    }
    return
  }
  func.func @transform_0(%arg0: i32, %arg1: i32, %arg2: i32) -> (i32, i32) {
    %c0_i32 = arith.constant 0 : i32
    return %arg0, %arg2 : i32, i32
  }
  func.func @transform_1(%arg0: i32, %arg1: i32, %arg2: i32) -> (i32, i32) {
    %c0_i32 = arith.constant 0 : i32
    return %arg2, %arg1 : i32, i32
  }
  func.func @transform_2(%arg0: i32, %arg1: i32, %arg2: i32) -> (i32, i32) {
    %c0_i32 = arith.constant 0 : i32
    %c0_i32_0 = arith.constant 0 : i32
    return %c0_i32, %arg1 : i32, i32
  }
  func.func @transform_3(%arg0: i32, %arg1: i32, %arg2: i32) -> (i32, i32) {
    %c0_i32 = arith.constant 0 : i32
    return %arg0, %arg1 : i32, i32
  }
}

module attributes {stable_mosaic.version = 11 : i64} {
  func.func @_max4_kernel(%arg0: i32, %arg1: memref<8x128xbf16, #tpu.memory_space<vmem>>, %arg2: memref<8x128xbf16, #tpu.memory_space<vmem>>, %arg3: memref<8x128xbf16, #tpu.memory_space<vmem>>, %arg4: memref<8x128xbf16, #tpu.memory_space<vmem>>, %arg5: memref<8x128xbf16, #tpu.memory_space<vmem>>) attributes {dimension_semantics = [#tpu.dimension_semantics<parallel>], iteration_bounds = array<i64: 1>, scalar_prefetch = 0 : i64, scratch_operands = 0 : i64, tpu.core_type = #tpu.core_type<tc>, window_params = [{transform_indices = @transform_0, window_bounds = array<i64: 8, 128>}, {transform_indices = @transform_1, window_bounds = array<i64: 8, 128>}, {transform_indices = @transform_2, window_bounds = array<i64: 8, 128>}, {transform_indices = @transform_3, window_bounds = array<i64: 8, 128>}, {transform_indices = @transform_4, window_bounds = array<i64: 8, 128>}]} {
    %c0 = arith.constant 0 : index
    %c0_0 = arith.constant 0 : index
    %0 = vector.load %arg1[%c0, %c0_0] : memref<8x128xbf16, #tpu.memory_space<vmem>>, vector<8x128xbf16>
    %c0_1 = arith.constant 0 : index
    %c0_2 = arith.constant 0 : index
    %1 = vector.load %arg2[%c0_1, %c0_2] : memref<8x128xbf16, #tpu.memory_space<vmem>>, vector<8x128xbf16>
    %2 = arith.maximumf %0, %1 : vector<8x128xbf16>
    %c0_3 = arith.constant 0 : index
    %c0_4 = arith.constant 0 : index
    %3 = vector.load %arg3[%c0_3, %c0_4] : memref<8x128xbf16, #tpu.memory_space<vmem>>, vector<8x128xbf16>
    %c0_5 = arith.constant 0 : index
    %c0_6 = arith.constant 0 : index
    %4 = vector.load %arg4[%c0_5, %c0_6] : memref<8x128xbf16, #tpu.memory_space<vmem>>, vector<8x128xbf16>
    %5 = arith.maximumf %3, %4 : vector<8x128xbf16>
    %6 = arith.maximumf %2, %5 : vector<8x128xbf16>
    %c0_7 = arith.constant 0 : index
    %c0_8 = arith.constant 0 : index
    %7 = vector.load %arg5[%c0_7, %c0_8] : memref<8x128xbf16, #tpu.memory_space<vmem>>, vector<8x128xbf16>
    tpu.vector_store %arg5[%c0_7, %c0_8], %6 {strides = array<i32>} : memref<8x128xbf16, #tpu.memory_space<vmem>>, vector<8x128xbf16>,
    return
  }
  func.func @transform_0(%arg0: i32) -> (i32, i32) {
    %c0_i32 = arith.constant 0 : i32
    %c0_i32_0 = arith.constant 0 : i32
    return %arg0, %c0_i32 : i32, i32
  }
  func.func @transform_1(%arg0: i32) -> (i32, i32) {
    %c0_i32 = arith.constant 0 : i32
    %c0_i32_0 = arith.constant 0 : i32
    return %arg0, %c0_i32 : i32, i32
  }
  func.func @transform_2(%arg0: i32) -> (i32, i32) {
    %c0_i32 = arith.constant 0 : i32
    %c0_i32_0 = arith.constant 0 : i32
    return %arg0, %c0_i32 : i32, i32
  }
  func.func @transform_3(%arg0: i32) -> (i32, i32) {
    %c0_i32 = arith.constant 0 : i32
    %c0_i32_0 = arith.constant 0 : i32
    return %arg0, %c0_i32 : i32, i32
  }
  func.func @transform_4(%arg0: i32) -> (i32, i32) {
    %c0_i32 = arith.constant 0 : i32
    %c0_i32_0 = arith.constant 0 : i32
    return %arg0, %c0_i32 : i32, i32
  }
}

module attributes {stable_mosaic.version = 11 : i64} {
  func.func @_fused_matmul_kernel(%arg0: i32, %arg1: i32, %arg2: i32, %arg3: memref<8x128xbf16, #tpu.memory_space<vmem>>, %arg4: memref<128x128xbf16, #tpu.memory_space<vmem>>, %arg5: memref<1x128xf32, #tpu.memory_space<vmem>>, %arg6: memref<8x128xbf16, #tpu.memory_space<vmem>>, %arg7: memref<8x128xf32, #tpu.memory_space<vmem>>) attributes {dimension_semantics = [#tpu.dimension_semantics<parallel>, #tpu.dimension_semantics<parallel>, #tpu.dimension_semantics<arbitrary>], iteration_bounds = array<i64: 1, 1, 9>, scalar_prefetch = 0 : i64, scratch_operands = 1 : i64, tpu.core_type = #tpu.core_type<tc>, window_params = [{transform_indices = @transform_0, window_bounds = array<i64: 8, 128>}, {transform_indices = @transform_1, window_bounds = array<i64: 128, 128>}, {transform_indices = @transform_2, window_bounds = array<i64: 1, 128>}, {transform_indices = @transform_3, window_bounds = array<i64: 8, 128>}]} {
    %c0_i32 = arith.constant 0 : i32
    %0 = arith.cmpi eq, %arg2, %c0_i32 : i32
    %1 = arith.extui %0 : i1 to i32
    %c0_i32_0 = arith.constant 0 : i32
    %2 = arith.cmpi ne, %1, %c0_i32_0 : i32
    scf.if %2 {
      %cst_9 = arith.constant 0.000000e+00 : f32
      %12 = vector.broadcast %cst_9 : f32 to vector<8x128xf32>
      %c0_10 = arith.constant 0 : index
      %c0_11 = arith.constant 0 : index
      %13 = vector.load %arg7[%c0_10, %c0_11] : memref<8x128xf32, #tpu.memory_space<vmem>>, vector<8x128xf32>
      tpu.vector_store %arg7[%c0_10, %c0_11], %12 {strides = array<i32>} : memref<8x128xf32, #tpu.memory_space<vmem>>, vector<8x128xf32>,
    } else {
    }
    %c0 = arith.constant 0 : index
    %c0_1 = arith.constant 0 : index
    %3 = vector.load %arg7[%c0, %c0_1] : memref<8x128xf32, #tpu.memory_space<vmem>>, vector<8x128xf32>
    %c0_2 = arith.constant 0 : index
    %c0_3 = arith.constant 0 : index
    %4 = vector.load %arg3[%c0_2, %c0_3] : memref<8x128xbf16, #tpu.memory_space<vmem>>, vector<8x128xbf16>
    %c0_4 = arith.constant 0 : index
    %c0_5 = arith.constant 0 : index
    %5 = vector.load %arg4[%c0_4, %c0_5] : memref<128x128xbf16, #tpu.memory_space<vmem>>, vector<128x128xbf16>
    %cst = arith.constant dense<0.000000e+00> : vector<8x128xf32>
    %6 = tpu.matmul %4, %5, %cst {dimension_numbers = #tpu.dot_dimension_numbers<[1], [0], [0], [1], [0, 0, 1, 1], [], []>} : vector<8x128xbf16>, vector<128x128xbf16>, vector<8x128xf32> -> vector<8x128xf32>
    %7 = arith.addf %3, %6 : vector<8x128xf32>
    %c0_6 = arith.constant 0 : index
    %c0_7 = arith.constant 0 : index
    %8 = vector.load %arg7[%c0_6, %c0_7] : memref<8x128xf32, #tpu.memory_space<vmem>>, vector<8x128xf32>
    tpu.vector_store %arg7[%c0_6, %c0_7], %7 {strides = array<i32>} : memref<8x128xf32, #tpu.memory_space<vmem>>, vector<8x128xf32>,
    %c8_i32 = arith.constant 8 : i32
    %9 = arith.cmpi eq, %arg2, %c8_i32 : i32
    %10 = arith.extui %9 : i1 to i32
    %c0_i32_8 = arith.constant 0 : i32
    %11 = arith.cmpi ne, %10, %c0_i32_8 : i32
    scf.if %11 {
      %c0_9 = arith.constant 0 : index
      %c0_10 = arith.constant 0 : index
      %12 = vector.load %arg7[%c0_9, %c0_10] : memref<8x128xf32, #tpu.memory_space<vmem>>, vector<8x128xf32>
      %c0_11 = arith.constant 0 : index
      %c0_12 = arith.constant 0 : index
      %13 = vector.load %arg5[%c0_11, %c0_12] : memref<1x128xf32, #tpu.memory_space<vmem>>, vector<1x128xf32>
      %14 = vector.broadcast %13 : vector<1x128xf32> to vector<8x128xf32>
      %15 = arith.addf %12, %14 : vector<8x128xf32>
      %16 = arith.negf %15 : vector<8x128xf32>
      %17 = math.exp %16 : vector<8x128xf32>
      %cst_13 = arith.constant 1.000000e+00 : f32
      %18 = vector.broadcast %cst_13 : f32 to vector<8x128xf32>
      %19 = arith.addf %18, %17 : vector<8x128xf32>
      %20 = arith.divf %18, %19 : vector<8x128xf32>
      %21 = arith.mulf %15, %20 : vector<8x128xf32>
      %22 = arith.truncf %21 : vector<8x128xf32> to vector<8x128xbf16>
      %c0_14 = arith.constant 0 : index
      %c0_15 = arith.constant 0 : index
      %23 = vector.load %arg6[%c0_14, %c0_15] : memref<8x128xbf16, #tpu.memory_space<vmem>>, vector<8x128xbf16>
      tpu.vector_store %arg6[%c0_14, %c0_15], %22 {strides = array<i32>} : memref<8x128xbf16, #tpu.memory_space<vmem>>, vector<8x128xbf16>,
    } else {
    }
    return
  }
  func.func @transform_0(%arg0: i32, %arg1: i32, %arg2: i32) -> (i32, i32) {
    %c0_i32 = arith.constant 0 : i32
    return %arg0, %arg2 : i32, i32
  }
  func.func @transform_1(%arg0: i32, %arg1: i32, %arg2: i32) -> (i32, i32) {
    %c0_i32 = arith.constant 0 : i32
    return %arg2, %arg1 : i32, i32
  }
  func.func @transform_2(%arg0: i32, %arg1: i32, %arg2: i32) -> (i32, i32) {
    %c0_i32 = arith.constant 0 : i32
    %c0_i32_0 = arith.constant 0 : i32
    return %c0_i32, %arg1 : i32, i32
  }
  func.func @transform_3(%arg0: i32, %arg1: i32, %arg2: i32) -> (i32, i32) {
    %c0_i32 = arith.constant 0 : i32
    return %arg0, %arg1 : i32, i32
  }
}

module attributes {stable_mosaic.version = 11 : i64} {
  func.func @_fused_matmul_kernel(%arg0: i32, %arg1: i32, %arg2: i32, %arg3: memref<8x128xbf16, #tpu.memory_space<vmem>>, %arg4: memref<128x128xbf16, #tpu.memory_space<vmem>>, %arg5: memref<1x128xf32, #tpu.memory_space<vmem>>, %arg6: memref<8x128xbf16, #tpu.memory_space<vmem>>, %arg7: memref<8x128xbf16, #tpu.memory_space<vmem>>, %arg8: memref<8x128xf32, #tpu.memory_space<vmem>>) attributes {dimension_semantics = [#tpu.dimension_semantics<parallel>, #tpu.dimension_semantics<parallel>, #tpu.dimension_semantics<arbitrary>], iteration_bounds = array<i64: 1, 1, 9>, scalar_prefetch = 0 : i64, scratch_operands = 1 : i64, tpu.core_type = #tpu.core_type<tc>, window_params = [{transform_indices = @transform_0, window_bounds = array<i64: 8, 128>}, {transform_indices = @transform_1, window_bounds = array<i64: 128, 128>}, {transform_indices = @transform_2, window_bounds = array<i64: 1, 128>}, {transform_indices = @transform_3, window_bounds = array<i64: 8, 128>}, {transform_indices = @transform_4, window_bounds = array<i64: 8, 128>}]} {
    %c0_i32 = arith.constant 0 : i32
    %0 = arith.cmpi eq, %arg2, %c0_i32 : i32
    %1 = arith.extui %0 : i1 to i32
    %c0_i32_0 = arith.constant 0 : i32
    %2 = arith.cmpi ne, %1, %c0_i32_0 : i32
    scf.if %2 {
      %cst_9 = arith.constant 0.000000e+00 : f32
      %12 = vector.broadcast %cst_9 : f32 to vector<8x128xf32>
      %c0_10 = arith.constant 0 : index
      %c0_11 = arith.constant 0 : index
      %13 = vector.load %arg8[%c0_10, %c0_11] : memref<8x128xf32, #tpu.memory_space<vmem>>, vector<8x128xf32>
      tpu.vector_store %arg8[%c0_10, %c0_11], %12 {strides = array<i32>} : memref<8x128xf32, #tpu.memory_space<vmem>>, vector<8x128xf32>,
    } else {
    }
    %c0 = arith.constant 0 : index
    %c0_1 = arith.constant 0 : index
    %3 = vector.load %arg8[%c0, %c0_1] : memref<8x128xf32, #tpu.memory_space<vmem>>, vector<8x128xf32>
    %c0_2 = arith.constant 0 : index
    %c0_3 = arith.constant 0 : index
    %4 = vector.load %arg3[%c0_2, %c0_3] : memref<8x128xbf16, #tpu.memory_space<vmem>>, vector<8x128xbf16>
    %c0_4 = arith.constant 0 : index
    %c0_5 = arith.constant 0 : index
    %5 = vector.load %arg4[%c0_4, %c0_5] : memref<128x128xbf16, #tpu.memory_space<vmem>>, vector<128x128xbf16>
    %cst = arith.constant dense<0.000000e+00> : vector<8x128xf32>
    %6 = tpu.matmul %4, %5, %cst {dimension_numbers = #tpu.dot_dimension_numbers<[1], [0], [0], [1], [0, 0, 1, 1], [], []>} : vector<8x128xbf16>, vector<128x128xbf16>, vector<8x128xf32> -> vector<8x128xf32>
    %7 = arith.addf %3, %6 : vector<8x128xf32>
    %c0_6 = arith.constant 0 : index
    %c0_7 = arith.constant 0 : index
    %8 = vector.load %arg8[%c0_6, %c0_7] : memref<8x128xf32, #tpu.memory_space<vmem>>, vector<8x128xf32>
    tpu.vector_store %arg8[%c0_6, %c0_7], %7 {strides = array<i32>} : memref<8x128xf32, #tpu.memory_space<vmem>>, vector<8x128xf32>,
    %c8_i32 = arith.constant 8 : i32
    %9 = arith.cmpi eq, %arg2, %c8_i32 : i32
    %10 = arith.extui %9 : i1 to i32
    %c0_i32_8 = arith.constant 0 : i32
    %11 = arith.cmpi ne, %10, %c0_i32_8 : i32
    scf.if %11 {
      %c0_9 = arith.constant 0 : index
      %c0_10 = arith.constant 0 : index
      %12 = vector.load %arg8[%c0_9, %c0_10] : memref<8x128xf32, #tpu.memory_space<vmem>>, vector<8x128xf32>
      %c0_11 = arith.constant 0 : index
      %c0_12 = arith.constant 0 : index
      %13 = vector.load %arg5[%c0_11, %c0_12] : memref<1x128xf32, #tpu.memory_space<vmem>>, vector<1x128xf32>
      %14 = vector.broadcast %13 : vector<1x128xf32> to vector<8x128xf32>
      %15 = arith.addf %12, %14 : vector<8x128xf32>
      %c0_13 = arith.constant 0 : index
      %c0_14 = arith.constant 0 : index
      %16 = vector.load %arg6[%c0_13, %c0_14] : memref<8x128xbf16, #tpu.memory_space<vmem>>, vector<8x128xbf16>
      %17 = arith.extf %16 : vector<8x128xbf16> to vector<8x128xf32>
      %18 = arith.addf %15, %17 : vector<8x128xf32>
      %19 = arith.negf %18 : vector<8x128xf32>
      %20 = math.exp %19 : vector<8x128xf32>
      %cst_15 = arith.constant 1.000000e+00 : f32
      %21 = vector.broadcast %cst_15 : f32 to vector<8x128xf32>
      %22 = arith.addf %21, %20 : vector<8x128xf32>
      %23 = arith.divf %21, %22 : vector<8x128xf32>
      %24 = arith.mulf %18, %23 : vector<8x128xf32>
      %25 = arith.truncf %24 : vector<8x128xf32> to vector<8x128xbf16>
      %c0_16 = arith.constant 0 : index
      %c0_17 = arith.constant 0 : index
      %26 = vector.load %arg7[%c0_16, %c0_17] : memref<8x128xbf16, #tpu.memory_space<vmem>>, vector<8x128xbf16>
      tpu.vector_store %arg7[%c0_16, %c0_17], %25 {strides = array<i32>} : memref<8x128xbf16, #tpu.memory_space<vmem>>, vector<8x128xbf16>,
    } else {
    }
    return
  }
  func.func @transform_0(%arg0: i32, %arg1: i32, %arg2: i32) -> (i32, i32) {
    %c0_i32 = arith.constant 0 : i32
    return %arg0, %arg2 : i32, i32
  }
  func.func @transform_1(%arg0: i32, %arg1: i32, %arg2: i32) -> (i32, i32) {
    %c0_i32 = arith.constant 0 : i32
    return %arg2, %arg1 : i32, i32
  }
  func.func @transform_2(%arg0: i32, %arg1: i32, %arg2: i32) -> (i32, i32) {
    %c0_i32 = arith.constant 0 : i32
    %c0_i32_0 = arith.constant 0 : i32
    return %c0_i32, %arg1 : i32, i32
  }
  func.func @transform_3(%arg0: i32, %arg1: i32, %arg2: i32) -> (i32, i32) {
    %c0_i32 = arith.constant 0 : i32
    return %arg0, %arg1 : i32, i32
  }
  func.func @transform_4(%arg0: i32, %arg1: i32, %arg2: i32) -> (i32, i32) {
    %c0_i32 = arith.constant 0 : i32
    return %arg0, %arg1 : i32, i32
  }
}

</mosaic_0001>

<bundles_post_ra>
// kernel: _lambda_.10
= control target key start
LH: loop header
LB: loop body
LE: loop exit
PB: predicated region body
PF: predicated region fallthrough
CT: control target
= control target key end

     0   :  { %s145_s0 = inlined_call_operand.vmem [shape: bf16[32,128], index: 0, kind: input, shape index: {}]   ;;  %s146_s1 = inlined_call_operand.vmem [shape: bf16[32,128], index: 1, kind: input, shape index: {}]   ;;  %s147_s2 = inlined_call_operand.vmem [shape: bf16[32,128], index: 2, kind: input, shape index: {}]   ;;  %s148_s3 = inlined_call_operand.vmem [shape: bf16[32,128], index: 3, kind: input, shape index: {}]   ;;  %s149_s4 = inlined_call_operand.vmem [shape: bf16[32,128], index: 4, kind: output, shape index: {}]  }
   0x1   :  { %v17_v0 = vld [vmem:[%s145_s0] sm:$0xf]  ;;  %v18_v1 = vld [vmem:[%s145_s0 + $0x4] sm:$0xf]  ;;  %v19_v10 = vld [vmem:[%s145_s0 + $0x8] sm:$0xf] }
   0x2   :  { %v21_v2 = vld [vmem:[%s146_s1] sm:$0xf]  ;;  %v22_v3 = vld [vmem:[%s146_s1 + $0x4] sm:$0xf]  ;;  %v20_v13 = vld [vmem:[%s145_s0 + $0xc] sm:$0xf] }
   0x3   :  { %v25_v4 = vmax.bf16 %v21_v2, %v17_v0  ;;  %v29_v5 = vld [vmem:[%s147_s2] sm:$0xf]  ;;  %v30_v6 = vld [vmem:[%s147_s2 + $0x4] sm:$0xf]  ;;  %v26_v7 = vmax.bf16 %v22_v3, %v18_v1  ;;  %v23_v14 = vld [vmem:[%s146_s1 + $0x8] sm:$0xf] }
   0x4   :  { %v33_v8 = vld [vmem:[%s148_s3] sm:$0xf]  ;;  %v34_v9 = vld [vmem:[%s148_s3 + $0x4] sm:$0xf]  ;;  %v24_v15 = vld [vmem:[%s146_s1 + $0xc] sm:$0xf]  ;;  %v27_v16 = vmax.bf16 %v23_v14, %v19_v10 }
   0x5   :  { %v37_v11 = vmax.bf16 %v33_v8, %v29_v5  ;;  %v38_v12 = vmax.bf16 %v34_v9, %v30_v6  ;;  %v28_v17 = vmax.bf16 %v24_v15, %v20_v13  ;;  %v31_v18 = vld [vmem:[%s147_s2 + $0x8] sm:$0xf]  ;;  %v32_v19 = vld [vmem:[%s147_s2 + $0xc] sm:$0xf] }
   0x6   :  { %v35_v20 = vld [vmem:[%s148_s3 + $0x8] sm:$0xf]  ;;  %v36_v23 = vld [vmem:[%s148_s3 + $0xc] sm:$0xf] }
   0x7   :  { %v41_v21 = vmax.bf16 %v37_v11, %v25_v4  ;;  %v42_v22 = vmax.bf16 %v38_v12, %v26_v7  ;;  %v39_v24 = vmax.bf16 %v35_v20, %v31_v18  ;;  %v40_v25 = vmax.bf16 %v36_v23, %v32_v19 }
   0x9   :  { %v63_v26 = vcombine.low %v41_v21, %v42_v22  ;;  %v43_v27 = vmax.bf16 %v39_v24, %v27_v16  ;;  %v44_v28 = vmax.bf16 %v40_v25, %v28_v17 }
   0xb   :  { %57 = vst [vmem:[%s149_s4] sm:$0xff] %v63_v26   ;;  %v64_v29 = vcombine.low %v43_v27, %v44_v28 }
   0xd   :  { %65 = vst [vmem:[%s149_s4 + $0x8] sm:$0xff] %v64_v29  }

// kernel: _lambda_.11
= control target key start
LH: loop header
LB: loop body
LE: loop exit
PB: predicated region body
PF: predicated region fallthrough
CT: control target
= control target key end

     0   :  { %s335_s1 = inlined_call_operand.vmem [shape: bf16[128,128], index: 1, kind: input, shape index: {}]   ;;  %s336_s0 = inlined_call_operand.vmem [shape: bf16[32,128], index: 0, kind: input, shape index: {}]   ;;  %s337_s2 = inlined_call_operand.vmem [shape: f32[1,128], index: 2, kind: input, shape index: {}]   ;;  %s338_s3 = inlined_call_operand.vmem [shape: bf16[32,128], index: 3, kind: output, shape index: {}]  }
   0x1   :  { %v266_v0 = vld [vmem:[%s335_s1] sm:$0xff]   ;;  %v267_v1 = vld [vmem:[%s335_s1 + $0x8] sm:$0xff]   ;;  %v268_v2 = vld [vmem:[%s335_s1 + $0x10] sm:$0xff]  }
   0x2   :  { %246 = vmatprep.subr.bf16.mxu0 %v266_v0  ;;  %v269_v3 = vld [vmem:[%s335_s1 + $0x18] sm:$0xff]   ;;  %v274_v4 = vld [vmem:[%s336_s0] sm:$0xff]   ;;  %v271_v6 = vld [vmem:[%s335_s1 + $0x28] sm:$0xff]  }
   0x3   :  { %247 = vmatpush3.bf16.msra.mxu0 %v266_v0  ;;  %262 = vmatprep.mubr.bf16.mxu0 %v274_v4  ;;  %v270_v5 = vld [vmem:[%s335_s1 + $0x20] sm:$0xff]   ;;  %v272_v7 = vld [vmem:[%s335_s1 + $0x30] sm:$0xff]   ;;  %v273_v8 = vld [vmem:[%s335_s1 + $0x38] sm:$0xff]  }
   0x4   :  { %248 = vmatprep.subr.bf16.mxu0 %v267_v1  ;;  %v275_v9 = vld [vmem:[%s336_s0 + $0x8] sm:$0xff]   ;;  %v216_v11 = vld [vmem:[%s337_s2] ss:$0 sm:$0xff] }
   0x7   :  { %249 = vmatpush3.bf16.msra.mxu0 %v267_v1 }
   0x8   :  { %250 = vmatprep.subr.bf16.mxu0 %v268_v2 }
   0xb   :  { %251 = vmatpush3.bf16.msra.mxu0 %v268_v2 }
   0xc   :  { %252 = vmatprep.subr.bf16.mxu0 %v269_v3 }
   0xf   :  { %253 = vmatpush3.bf16.msra.mxu0 %v269_v3 }
  0x10   :  { %254 = vmatprep.subr.bf16.mxu0 %v270_v5 }
  0x13   :  { %255 = vmatpush3.bf16.msra.mxu0 %v270_v5 }
  0x14   :  { %256 = vmatprep.subr.bf16.mxu0 %v271_v6 }
  0x17   :  { %257 = vmatpush3.bf16.msra.mxu0 %v271_v6 }
  0x18   :  { %258 = vmatprep.subr.bf16.mxu0 %v272_v7 }
  0x1b   :  { %259 = vmatpush3.bf16.msra.mxu0 %v272_v7 }
  0x1c   :  { %260 = vmatprep.subr.bf16.mxu0 %v273_v8 }
  0x1f   :  { %261 = vmatpush3.bf16.msra.mxu0 %v273_v8 }
  0x22   :  { %263 = vmatmul.mubr.bf16.vlgmr.msra.gmra.mrb[0].mxu0 %v275_v9 }
  0xf5   :  { %v264_v10 = vpop.f32.mrb[0].mxu0 }
  0xf6   :  { %v141_v12 = vpop.f32.mrb[1].mxu0  ;;  %v180_v14 = vadd.f32 %v264_v10, %v216_v11 }
  0xf7   :  { %v265_v13 = vpop.f32.mrb[2].mxu0  ;;  %v178_v17 = vadd.f32 %v216_v11, %v141_v12 }
  0xf8   :  { %v181_v15 = vadd.f32 %v265_v13, %v216_v11  ;;  %v144_v16 = vpop.f32.mrb[3].mxu0 }
  0xf9   :  { %v179_v18 = vadd.f32 %v216_v11, %v144_v16 }
  0xfa   :  { %v233_v19 = vpack.c.bf16 %v181_v15, %v180_v14 }
  0xfb   :  { %v228_v20 = vpack.c.bf16 %v179_v18, %v178_v17 }
  0xfc   :  { %235 = vst [vmem:[%s338_s3 + $0x8] sm:$0xff] %v233_v19  }
  0xfd   :  { %229 = vst [vmem:[%s338_s3] sm:$0xff] %v228_v20  }

// kernel: _lambda_.9
= control target key start
LH: loop header
LB: loop body
LE: loop exit
PB: predicated region body
PF: predicated region fallthrough
CT: control target
= control target key end

     0   :  { %v864_v0 = vmov 0   ;;  %vm215_vm0 = vcmask 154624   ;;  %vm240_vm1 = vcmask 1040384   ;;  %vm241_vm2 = vcmask 1041408   ;;  %s1081_s1 = inlined_call_operand.vmem [shape: bf16[147,128], index: 1, kind: input, shape index: {}]   ;;  %s1082_s0 = inlined_call_operand.vmem [shape: bf16[128,147], index: 0, kind: input, shape index: {}]   ;;  %s1083_s2 = inlined_call_operand.vmem [shape: f32[1,128], index: 2, kind: input, shape index: {}]   ;;  %s1084_s3 = inlined_call_operand.vmem [shape: bf16[128,128], index: 3, kind: output, shape index: {}]  }
   0x1   :  { %247 = vmatprep.subr.bf16.mxu0 %v864_v0  ;;  %744 = vmatprep.subr.bf16.mxu1 %v864_v0  ;;  %v766_v1 = vld [vmem:[%s1081_s1] sm:$0xff]   ;;  %v767_v2 = vld [vmem:[%s1081_s1 + $0x8] sm:$0xff]   ;;  %v768_v3 = vld [vmem:[%s1081_s1 + $0x10] sm:$0xff]   ;;  %v865_v11 = vmov 65535  }
   0x2   :  { %248 = vmatpush1.bf16.msra.mxu0 %v766_v1  ;;  %754 = vmatpush1.bf16.msra.mxu1 %v766_v1  ;;  %v769_v4 = vld [vmem:[%s1081_s1 + $0x18] sm:$0xff]   ;;  %v778_v5 = vld [vmem:[%s1082_s0 + $0x4] ss:$8 sps:$4 sm:$0xff]   ;;  %v772_v9 = vld [vmem:[%s1081_s1 + $0x30] sm:$0xff]   ;;  %v242_v12 = vsel %vm240_vm1, 4294967295, %v865_v11 }
   0x3   :  { %249 = vmatprep.subr.bf16.mxu0 %v864_v0  ;;  %745 = vmatprep.subr.bf16.mxu1 %v864_v0  ;;  %v781_v6 = vld [vmem:[%s1082_s0 + $0x44] ss:$8 sps:$4 sm:$0xff]   ;;  %v773_v10 = vld [vmem:[%s1081_s1 + $0x38] sm:$0xff]   ;;  %v775_v14 = vld [vmem:[%s1081_s1 + $0x48] ss:$0 sps:$4 sm:$0x33]  }
   0x4   :  { %640 = vmatprep.mubr.msk.bf16.mxu0 %vm215_vm0, %v778_v5  ;;  %v770_v7 = vld [vmem:[%s1081_s1 + $0x20] sm:$0xff]   ;;  %644 = vmatprep.mubr.msk.bf16.mxu1 %vm215_vm0, %v781_v6  ;;  %v771_v8 = vld [vmem:[%s1081_s1 + $0x28] sm:$0xff]   ;;  %v243_v15 = vsel %vm241_vm2, %v242_v12, 0  ;;  %v782_v19 = vld [vmem:[%s1082_s0 + $0x14] ss:$8 sps:$4 sm:$0xff]  }
   0x5   :  { %v774_v13 = vld [vmem:[%s1081_s1 + $0x40] sm:$0xff]   ;;  %v245_v16 = vand.u32 %v775_v14, %v243_v15  ;;  %v784_v20 = vld [vmem:[%s1082_s0 + $0x54] ss:$8 sps:$4 sm:$0xff]   ;;  %v786_v21 = vld [vmem:[%s1082_s0 + $0x10] ss:$8 sps:$4 sm:$0xff]  }
   0x6   :  { %250 = vmatpush1.bf16.msra.mxu0 %v767_v2  ;;  %755 = vmatpush1.bf16.msra.mxu1 %v767_v2  ;;  %v776_v17 = vld [vmem:[%s1082_s0] ss:$8 sps:$4 sm:$0xff]   ;;  %v787_v22 = vld [vmem:[%s1082_s0 + $0x50] ss:$8 sps:$4 sm:$0xff]   ;;  %v788_v23 = vld [vmem:[%s1082_s0 + $0x24] ss:$8 sps:$4 sm:$0xff]  }
   0x7   :  { %251 = vmatprep.subr.bf16.mxu0 %v864_v0  ;;  %746 = vmatprep.subr.bf16.mxu1 %v864_v0  ;;  %v779_v18 = vld [vmem:[%s1082_s0 + $0x40] ss:$8 sps:$4 sm:$0xff]   ;;  %v790_v24 = vld [vmem:[%s1082_s0 + $0x64] ss:$8 sps:$4 sm:$0xff]   ;;  %v794_v27 = vld [vmem:[%s1082_s0 + $0x34] ss:$8 sps:$4 sm:$0xff]  }
   0x8   :  { %v792_v25 = vld [vmem:[%s1082_s0 + $0x20] ss:$8 sps:$4 sm:$0xff]   ;;  %v796_v28 = vld [vmem:[%s1082_s0 + $0x74] ss:$8 sps:$4 sm:$0xff]   ;;  %v798_v29 = vld [vmem:[%s1082_s0 + $0x30] ss:$8 sps:$4 sm:$0xff]  }
   0x9   :  { %v793_v26 = vld [vmem:[%s1082_s0 + $0x60] ss:$8 sps:$4 sm:$0xff]   ;;  %v799_v30 = vld [vmem:[%s1082_s0 + $0x70] ss:$8 sps:$4 sm:$0xff]  }
   0xa   :  { %252 = vmatpush1.bf16.msra.mxu0 %v768_v3  ;;  %756 = vmatpush1.bf16.msra.mxu1 %v768_v3  ;;  %v975_v31 = vld [vmem:[%s1083_s2] ss:$0 sm:$0xff] }
   0xb   :  { %253 = vmatprep.subr.bf16.mxu0 %v864_v0  ;;  %747 = vmatprep.subr.bf16.mxu1 %v864_v0 }
   0xe   :  { %254 = vmatpush1.bf16.msra.mxu0 %v769_v4  ;;  %757 = vmatpush1.bf16.msra.mxu1 %v769_v4 }
   0xf   :  { %255 = vmatprep.subr.bf16.mxu0 %v864_v0  ;;  %748 = vmatprep.subr.bf16.mxu1 %v864_v0 }
  0x12   :  { %256 = vmatpush1.bf16.msra.mxu0 %v770_v7  ;;  %758 = vmatpush1.bf16.msra.mxu1 %v770_v7 }
  0x13   :  { %257 = vmatprep.subr.bf16.mxu0 %v864_v0  ;;  %749 = vmatprep.subr.bf16.mxu1 %v864_v0 }
  0x16   :  { %258 = vmatpush1.bf16.msra.mxu0 %v771_v8  ;;  %759 = vmatpush1.bf16.msra.mxu1 %v771_v8 }
  0x17   :  { %259 = vmatprep.subr.bf16.mxu0 %v864_v0  ;;  %750 = vmatprep.subr.bf16.mxu1 %v864_v0 }
  0x1a   :  { %260 = vmatpush1.bf16.msra.mxu0 %v772_v9  ;;  %760 = vmatpush1.bf16.msra.mxu1 %v772_v9 }
  0x1b   :  { %261 = vmatprep.subr.bf16.mxu0 %v864_v0  ;;  %751 = vmatprep.subr.bf16.mxu1 %v864_v0 }
  0x1e   :  { %262 = vmatpush1.bf16.msra.mxu0 %v773_v10  ;;  %761 = vmatpush1.bf16.msra.mxu1 %v773_v10 }
  0x1f   :  { %263 = vmatprep.subr.bf16.mxu0 %v864_v0  ;;  %752 = vmatprep.subr.bf16.mxu1 %v864_v0 }
  0x22   :  { %264 = vmatpush1.bf16.msra.mxu0 %v774_v13  ;;  %762 = vmatpush1.bf16.msra.mxu1 %v774_v13 }
  0x23   :  { %265 = vmatprep.subr.bf16.mxu0 %v864_v0  ;;  %753 = vmatprep.subr.bf16.mxu1 %v864_v0 }
  0x26   :  { %266 = vmatpush1.bf16.msra.mxu0 %v245_v16  ;;  %763 = vmatpush1.bf16.msra.mxu1 %v245_v16 }
  0x29   :  { %280 = vmatmul.mubr.bf16.vlgmr.msra.gmra.mrb[0].mxu0 %v776_v17  ;;  %312 = vmatmul.mubr.bf16.vlgmr.msra.gmra.mrb[0].mxu1 %v779_v18 }
  0x2a   :  { %641 = vmatprep.mubr.msk.bf16.mxu0 %vm215_vm0, %v782_v19  ;;  %645 = vmatprep.mubr.msk.bf16.mxu1 %vm215_vm0, %v784_v20 }
  0x31   :  { %288 = vmatmul.mubr.bf16.gmra.mrb[4].mxu0 %v786_v21  ;;  %320 = vmatmul.mubr.bf16.gmra.mrb[4].mxu1 %v787_v22 }
  0x32   :  { %642 = vmatprep.mubr.msk.bf16.mxu0 %vm215_vm0, %v788_v23  ;;  %646 = vmatprep.mubr.msk.bf16.mxu1 %vm215_vm0, %v790_v24 }
  0x39   :  { %296 = vmatmul.mubr.bf16.gmra.mrb[8].mxu0 %v792_v25  ;;  %328 = vmatmul.mubr.bf16.gmra.mrb[8].mxu1 %v793_v26 }
  0x3a   :  { %643 = vmatprep.mubr.msk.bf16.mxu0 %vm215_vm0, %v794_v27  ;;  %647 = vmatprep.mubr.msk.bf16.mxu1 %vm215_vm0, %v796_v28 }
  0x41   :  { %304 = vmatmul.mubr.bf16.gmra.mrb[12].mxu0 %v798_v29  ;;  %336 = vmatmul.mubr.bf16.gmra.mrb[12].mxu1 %v799_v30 }
  0xfc   :  { %v281_v32 = vpop.f32.mrb[0].mxu0  ;;  %v313_v33 = vpop.f32.mrb[0].mxu1 }
  0xfd   :  { %v978_v34 = vadd.f32 %v975_v31, %v281_v32  ;;  %v981_v35 = vadd.f32 %v975_v31, %v313_v33  ;;  %v283_v36 = vpop.f32.mrb[1].mxu0  ;;  %v315_v37 = vpop.f32.mrb[1].mxu1 }
  0xfe   :  { %v284_v38 = vpop.f32.mrb[2].mxu0  ;;  %v316_v39 = vpop.f32.mrb[2].mxu1 }
  0xff   :  { %v649_v40 = vmul.f32 -1.442695, %v978_v34  ;;  %v657_v41 = vmul.f32 -1.442695, %v981_v35  ;;  %v986_v42 = vadd.f32 %v975_v31, %v284_v38  ;;  %v989_v43 = vadd.f32 %v975_v31, %v316_v39  ;;  %v286_v44 = vpop.f32.mrb[3].mxu0  ;;  %v318_v45 = vpop.f32.mrb[3].mxu1 }
 0x101   :  { %800 = vpow2.f32 %v649_v40  ;;  %v650_v46 = vmul.f32 -1.442695, %v986_v42  ;;  %v658_v47 = vmul.f32 -1.442695, %v989_v43 }
 0x102   :  { %802 = vpow2.f32 %v657_v41 }
 0x103   :  { %804 = vpow2.f32 %v650_v46 }
 0x104   :  { %806 = vpow2.f32 %v658_v47  ;;  %v289_v48 = vpop.f32.mrb[4].mxu0  ;;  %v321_v49 = vpop.f32.mrb[4].mxu1 }
 0x105   :  { %v994_v50 = vadd.f32 %v975_v31, %v289_v48  ;;  %v997_v51 = vadd.f32 %v975_v31, %v321_v49  ;;  %v291_v52 = vpop.f32.mrb[5].mxu0  ;;  %v323_v53 = vpop.f32.mrb[5].mxu1 }
 0x106   :  { %v292_v54 = vpop.f32.mrb[6].mxu0  ;;  %v324_v55 = vpop.f32.mrb[6].mxu1 }
 0x107   :  { %v651_v56 = vmul.f32 -1.442695, %v994_v50  ;;  %v659_v57 = vmul.f32 -1.442695, %v997_v51  ;;  %v1002_v58 = vadd.f32 %v975_v31, %v292_v54  ;;  %v1005_v59 = vadd.f32 %v975_v31, %v324_v55  ;;  %v294_v60 = vpop.f32.mrb[7].mxu0  ;;  %v326_v61 = vpop.f32.mrb[7].mxu1 }
 0x109   :  { %808 = vpow2.f32 %v651_v56  ;;  %v652_v62 = vmul.f32 -1.442695, %v1002_v58  ;;  %v660_v63 = vmul.f32 -1.442695, %v1005_v59 }
 0x10a   :  { %810 = vpow2.f32 %v659_v57 }
 0x10b   :  { %v801_v0 = vpop.eup %800  ;;  %812 = vpow2.f32 %v652_v62 }
 0x10c   :  { %v803_v1 = vpop.eup %802  ;;  %v466_v2 = vadd.f32 1.0, %v801_v0  ;;  %814 = vpow2.f32 %v660_v63  ;;  %v297_v3 = vpop.f32.mrb[8].mxu0 }
 0x10d   :  { %v329_v4 = vpop.f32.mrb[8].mxu1  ;;  %v805_v5 = vpop.eup %804  ;;  %v474_v6 = vadd.f32 1.0, %v803_v1  ;;  %v1010_v7 = vadd.f32 %v975_v31, %v297_v3 }
 0x10e   :  { %v1013_v8 = vadd.f32 %v975_v31, %v329_v4  ;;  %v299_v9 = vpop.f32.mrb[9].mxu0  ;;  %v331_v10 = vpop.f32.mrb[9].mxu1  ;;  %816 = vrcp.f32 %v466_v2  ;;  %v467_v12 = vadd.f32 1.0, %v805_v5 }
 0x10f   :  { %v807_v11 = vpop.eup %806  ;;  %v300_v13 = vpop.f32.mrb[10].mxu0  ;;  %818 = vrcp.f32 %v474_v6  ;;  %v653_v16 = vmul.f32 -1.442695, %v1010_v7 }
 0x110   :  { %v332_v14 = vpop.f32.mrb[10].mxu1  ;;  %v475_v15 = vadd.f32 1.0, %v807_v11  ;;  %v661_v17 = vmul.f32 -1.442695, %v1013_v8  ;;  %v302_v18 = vpop.f32.mrb[11].mxu0  ;;  %820 = vrcp.f32 %v467_v12  ;;  %v1018_v19 = vadd.f32 %v975_v31, %v300_v13 }
 0x111   :  { %v1021_v20 = vadd.f32 %v975_v31, %v332_v14  ;;  %v334_v21 = vpop.f32.mrb[11].mxu1 }
 0x112   :  { %822 = vrcp.f32 %v475_v15  ;;  %v654_v22 = vmul.f32 -1.442695, %v1018_v19 }
 0x113   :  { %824 = vpow2.f32 %v653_v16  ;;  %v662_v23 = vmul.f32 -1.442695, %v1021_v20  ;;  %v809_v24 = vpop.eup %808 }
 0x114   :  { %826 = vpow2.f32 %v661_v17  ;;  %v811_v25 = vpop.eup %810  ;;  %v468_v26 = vadd.f32 1.0, %v809_v24  ;;  %v305_v27 = vpop.f32.mrb[12].mxu0 }
 0x115   :  { %828 = vpow2.f32 %v654_v22  ;;  %v337_v28 = vpop.f32.mrb[12].mxu1  ;;  %v813_v29 = vpop.eup %812  ;;  %v476_v30 = vadd.f32 1.0, %v811_v25  ;;  %v1026_v32 = vadd.f32 %v975_v31, %v305_v27 }
 0x116   :  { %830 = vpow2.f32 %v662_v23  ;;  %v1029_v33 = vadd.f32 %v975_v31, %v337_v28  ;;  %v307_v36 = vpop.f32.mrb[13].mxu0  ;;  %v339_v37 = vpop.f32.mrb[13].mxu1  ;;  %v469_v39 = vadd.f32 1.0, %v813_v29 }
 0x117   :  { %v815_v38 = vpop.eup %814  ;;  %832 = vrcp.f32 %v468_v26  ;;  %v308_v40 = vpop.f32.mrb[14].mxu0  ;;  %v655_v45 = vmul.f32 -1.442695, %v1026_v32 }
 0x118   :  { %v340_v41 = vpop.f32.mrb[14].mxu1  ;;  %834 = vrcp.f32 %v476_v30  ;;  %v477_v44 = vadd.f32 1.0, %v815_v38  ;;  %v663_v46 = vmul.f32 -1.442695, %v1029_v33  ;;  %v310_v47 = vpop.f32.mrb[15].mxu0  ;;  %v1034_v49 = vadd.f32 %v975_v31, %v308_v40 }
 0x119   :  { %v817_v48 = vpop.eup %816  ;;  %836 = vrcp.f32 %v469_v39  ;;  %v1037_v52 = vadd.f32 %v975_v31, %v340_v41  ;;  %v342_v53 = vpop.f32.mrb[15].mxu1 }
 0x11a   :  { %v819_v54 = vpop.eup %818  ;;  %838 = vrcp.f32 %v477_v44  ;;  %v656_v56 = vmul.f32 -1.442695, %v1034_v49  ;;  %v514_v61 = vmul.f32 %v817_v48, %v978_v34 }
 0x11b   :  { %v821_v55 = vpop.eup %820  ;;  %840 = vpow2.f32 %v655_v45  ;;  %v664_v57 = vmul.f32 -1.442695, %v1037_v52  ;;  %v522_v0 = vmul.f32 %v819_v54, %v981_v35 }
 0x11c   :  { %v823_v60 = vpop.eup %822  ;;  %v515_v62 = vmul.f32 %v821_v55, %v986_v42  ;;  %842 = vpow2.f32 %v663_v46 }
 0x11d   :  { %v825_v63 = vpop.eup %824  ;;  %v523_v31 = vmul.f32 %v823_v60, %v989_v43  ;;  %844 = vpow2.f32 %v656_v56 }
 0x11e   :  { %v827_v1 = vpop.eup %826  ;;  %v700_v2 = vpack.c.bf16 %v515_v62, %v514_v61  ;;  %v470_v3 = vadd.f32 1.0, %v825_v63  ;;  %846 = vpow2.f32 %v664_v57 }
 0x11f   :  { %v829_v4 = vpop.eup %828  ;;  %v720_v5 = vpack.c.bf16 %v523_v31, %v522_v0  ;;  %v478_v6 = vadd.f32 1.0, %v827_v1 }
 0x120   :  { %v831_v9 = vpop.eup %830  ;;  %701 = vst [vmem:[%s1084_s3] sm:$0xff] %v700_v2   ;;  %848 = vrcp.f32 %v470_v3  ;;  %v471_v34 = vadd.f32 1.0, %v829_v4 }
 0x121   :  { %v833_v42 = vpop.eup %832  ;;  %740 = vst [vmem:[%s1084_s3 + $0x20] sm:$0xff] %v720_v5   ;;  %850 = vrcp.f32 %v478_v6  ;;  %v479_v35 = vadd.f32 1.0, %v831_v9 }
 0x122   :  { %v835_v43 = vpop.eup %834  ;;  %852 = vrcp.f32 %v471_v34  ;;  %v516_v12 = vmul.f32 %v833_v42, %v994_v50 }
 0x123   :  { %v837_v10 = vpop.eup %836  ;;  %854 = vrcp.f32 %v479_v35  ;;  %v524_v15 = vmul.f32 %v835_v43, %v997_v51 }
 0x124   :  { %v839_v11 = vpop.eup %838  ;;  %v517_v13 = vmul.f32 %v837_v10, %v1002_v58 }
 0x125   :  { %v841_v14 = vpop.eup %840  ;;  %v525_v16 = vmul.f32 %v839_v11, %v1005_v59 }
 0x126   :  { %v843_v17 = vpop.eup %842  ;;  %v705_v18 = vpack.c.bf16 %v517_v13, %v516_v12  ;;  %v472_v21 = vadd.f32 1.0, %v841_v14 }
 0x127   :  { %v845_v22 = vpop.eup %844  ;;  %v725_v23 = vpack.c.bf16 %v525_v16, %v524_v15  ;;  %v480_v24 = vadd.f32 1.0, %v843_v17 }
 0x128   :  { %v847_v25 = vpop.eup %846  ;;  %737 = vst [vmem:[%s1084_s3 + $0x8] sm:$0xff] %v705_v18   ;;  %856 = vrcp.f32 %v472_v21  ;;  %v473_v50 = vadd.f32 1.0, %v845_v22 }
 0x129   :  { %741 = vst [vmem:[%s1084_s3 + $0x28] sm:$0xff] %v725_v23   ;;  %858 = vrcp.f32 %v480_v24  ;;  %v481_v51 = vadd.f32 1.0, %v847_v25 }
 0x12a   :  { %v849_v58 = vpop.eup %848  ;;  %860 = vrcp.f32 %v473_v50 }
 0x12b   :  { %v851_v59 = vpop.eup %850  ;;  %862 = vrcp.f32 %v481_v51  ;;  %v518_v28 = vmul.f32 %v849_v58, %v1010_v7 }
 0x12c   :  { %v853_v26 = vpop.eup %852  ;;  %v526_v30 = vmul.f32 %v851_v59, %v1013_v8 }
 0x12d   :  { %v855_v27 = vpop.eup %854  ;;  %v519_v29 = vmul.f32 %v853_v26, %v1018_v19 }
 0x12e   :  { %v527_v36 = vmul.f32 %v855_v27, %v1021_v20 }
 0x12f   :  { %v710_v37 = vpack.c.bf16 %v519_v29, %v518_v28 }
 0x130   :  { %v730_v38 = vpack.c.bf16 %v527_v36, %v526_v30 }
 0x131   :  { %738 = vst [vmem:[%s1084_s3 + $0x10] sm:$0xff] %v710_v37  }
 0x132   :  { %v857_v39 = vpop.eup %856  ;;  %742 = vst [vmem:[%s1084_s3 + $0x30] sm:$0xff] %v730_v38  }
 0x133   :  { %v859_v40 = vpop.eup %858  ;;  %v520_v19 = vmul.f32 %v857_v39, %v1026_v32 }
 0x134   :  { %v861_v41 = vpop.eup %860  ;;  %v528_v20 = vmul.f32 %v859_v40, %v1029_v33 }
 0x135   :  { %v863_v7 = vpop.eup %862  ;;  %v521_v8 = vmul.f32 %v861_v41, %v1034_v49 }
 0x136   :  { %v529_v44 = vmul.f32 %v863_v7, %v1037_v52 }
 0x137   :  { %v715_v45 = vpack.c.bf16 %v521_v8, %v520_v19 }
 0x138   :  { %v735_v46 = vpack.c.bf16 %v529_v44, %v528_v20 }
 0x139   :  { %739 = vst [vmem:[%s1084_s3 + $0x18] sm:$0xff] %v715_v45  }
 0x13a   :  { %743 = vst [vmem:[%s1084_s3 + $0x38] sm:$0xff] %v735_v46  }

// kernel: _lambda_.12
= control target key start
LH: loop header
LB: loop body
LE: loop exit
PB: predicated region body
PF: predicated region fallthrough
CT: control target
= control target key end

     0   :  { %s840_s12 = smov 0   ;;  %s842_s13 = smov 0   ;;  %s933_s0 = inlined_call_operand.vmem [shape: bf16[32,1152], index: 0, kind: input, shape index: {}]   ;;  %s934_s1 = inlined_call_operand.vmem [shape: bf16[1152,128], index: 1, kind: input, shape index: {}]   ;;  %s935_s2 = inlined_call_operand.vmem [shape: f32[1,128], index: 2, kind: input, shape index: {}]   ;;  %s936_s3 = inlined_call_operand.vmem [shape: bf16[32,128], index: 3, kind: output, shape index: {}]  }
   0x1   :  { %s844_s14 = smov 0   ;;  %s846_s15 = smov 0  }
   0x2   :  { %s848_s16 = smov 0  }
   0x3 LB: > { %s25_s17 = sadd.s32 1, %s813_s15  ;;  %p48_p1 = scmp.ne.s32.totalorder %s805_s13, %s801_s12  ;;  %s817_s16 = sphi %s848_s16, %s13_s16   ;;  %s813_s15 = sphi %s846_s15, %s940_s15   ;;  %s809_s14 = sphi %s844_s14, %s939_s14   ;;  %s805_s13 = sphi %s842_s13, %s938_s13   ;;  %s801_s12 = sphi %s840_s12, %s937_s12  }
   0x4   : > { %p26_p0 = scmp.ge.s32.totalorder %s25_s17, 9  ;;  %p49_p2 = scmp.eq.s32.totalorder %s817_s16, 0 }
   0x5   : > { %s41_s19 = sadd.s32 1, %s805_s13  ;;  %p635_p5 = scmp.ge.s32.totalorder %s817_s16, 9 }
   0x6   : > { %s942_s17 = smov (%p26_p0, %s25_s17), 0  ;;  %p50_p3 = por %p49_p2, %p48_p1 }
   0x7   : > { %s37_s18 = ssub.s32 %s813_s15, %s942_s17  ;;  %162 = sbr.rel (%p635_p5) target bundleno = 21 (0x15), region = 20 }
   0x8   : > { %p39_p4 = scmp.eq.s32.totalorder %s37_s18, 0 }
   0xa   : > { %s875_s20 = scalar_select %p39_p4, %s805_s13, %s41_s19  }
   0xe   : > { %165 = sbr.rel (!%p50_p3) target bundleno = 21 (0x15), region = 24  ;;  %s167_s21 = sand.u32 (%p50_p3), 1, %s805_s13  }
   0xf   : > { %s637_s22 = sshll.u32 (%p50_p3), %s813_s15, 2  ;;  %s636_s23 = sshll.u32 (%p50_p3), %s167_s21, 4 }
  0x10   : > { %s174_s26 = scalar_lea.vmem (%p50_p3), %s933_s0, %s637_s22  ;;  %s169_s27 = scalar_lea.vmem (%p50_p3), [#allocation3], %s636_s23 }
  0x11   : > { %v190_v0 = vld [vmem:[%s174_s26] sm:$0xf] (%p50_p3)  ;;  %v192_v1 = vld [vmem:[%s174_s26 + $0x24] sm:$0xf] (%p50_p3)  ;;  %v194_v2 = vld [vmem:[%s174_s26 + $0x48] sm:$0xf] (%p50_p3) }
  0x12   : > { %191 = vst [vmem:[%s169_s27] sm:$0xf] (%p50_p3), %v190_v0  ;;  %193 = vst [vmem:[%s169_s27 + $0x4] sm:$0xf] (%p50_p3), %v192_v1  ;;  %v196_v3 = vld [vmem:[%s174_s26 + $0x6c] sm:$0xf] (%p50_p3) }
  0x13   : > { %195 = vst [vmem:[%s169_s27 + $0x8] sm:$0xf] (%p50_p3), %v194_v2  ;;  %197 = vst [vmem:[%s169_s27 + $0xc] sm:$0xf] (%p50_p3), %v196_v3 }
  0x15 PF: > { %p638_p6 = scmp.ge.s32.totalorder %s817_s16, 1  ;;  %p239_p7 = scmp.lt.s32.totalorder %s817_s16, 10 }
  0x17   : > { %p240_p8 = pnand %p638_p6, %p239_p7 }
  0x18   : > { %s246_s28 = sand.u32 (!%p240_p8), 1, %s801_s12   ;;  %s640_s29 = sshll.u32 (!%p240_p8), %s809_s14, 4 }
  0x19   : > { %243 = sbr.rel (%p240_p8) target bundleno = 332 (0x14c), region = 69  ;;  %s887_s30 = sshll.u32 (!%p240_p8), %s246_s28, 4 }
  0x1a   : > { %p285_p9 = scmp.lt.s32.totalorder (!%p240_p8), %s640_s29, 143  ;;  %s248_s8 = scalar_lea.vmem (!%p240_p8), [#allocation3], %s887_s30 }
  0x1b   : > { %p642_p10 = scmp.ne.s32.totalorder (!%p240_p8), %s809_s14, 0 }
  0x20   : > { %s944_s29 = smov (!%p285_p9, %s640_s29), 143  ;;  %309 = sbr.rel (%p642_p10) target bundleno = 39 (0x27), region = 77 }
  0x21   : > { %s641_s4 = sshll.u32 %s944_s29, 2  ;;  %v819_v4 = vmov (!%p642_p10), 0.0  }
  0x22   : > { %s892_s7 = scalar_lea.vmem %s934_s1, %s641_s4  ;;  %310 = vst [vmem:[#allocation2] sm:$0xff] (!%p642_p10), %v819_v4  ;;  %311 = vst [vmem:[#allocation2 + $0x8] sm:$0xff] (!%p642_p10), %v819_v4 }
  0x23   : > { %312 = vst [vmem:[#allocation2 + $0x10] sm:$0xff] (!%p642_p10), %v819_v4  ;;  %313 = vst [vmem:[#allocation2 + $0x18] sm:$0xff] (!%p642_p10), %v819_v4 }
  0x27 PF: > { %v753_v5 = vld [vmem:[%s892_s7] sm:$0xff]   ;;  %v754_v6 = vld [vmem:[%s892_s7 + $0x8] sm:$0xff]   ;;  %v755_v7 = vld [vmem:[%s892_s7 + $0x10] sm:$0xff]   ;;  %p653_p11 = scmp.ne.s32.totalorder %s809_s14, 8 }
  0x28   : > { %692 = vmatprep.subr.bf16.mxu0 %v753_v5  ;;  %v756_v8 = vld [vmem:[%s892_s7 + $0x18] sm:$0xff]   ;;  %v761_v9 = vld [vmem:[%s248_s8] sm:$0xff]   ;;  %v758_v11 = vld [vmem:[%s892_s7 + $0x28] sm:$0xff]  }
  0x29   : > { %693 = vmatpush3.bf16.msra.mxu0 %v753_v5  ;;  %708 = vmatprep.mubr.bf16.mxu0 %v761_v9  ;;  %v757_v10 = vld [vmem:[%s892_s7 + $0x20] sm:$0xff]   ;;  %v759_v12 = vld [vmem:[%s892_s7 + $0x30] sm:$0xff]   ;;  %v760_v13 = vld [vmem:[%s892_s7 + $0x38] sm:$0xff]  }
  0x2a   : > { %694 = vmatprep.subr.bf16.mxu0 %v754_v6  ;;  %v762_v14 = vld [vmem:[%s248_s8 + $0x8] sm:$0xff]   ;;  %v316_v15 = vld [vmem:[#allocation2 + $0x10] sm:$0xff]  ;;  %v314_v16 = vld [vmem:[#allocation2] sm:$0xff] }
  0x2b   : > { %v317_v18 = vld [vmem:[#allocation2 + $0x18] sm:$0xff]  ;;  %v315_v21 = vld [vmem:[#allocation2 + $0x8] sm:$0xff]  ;;  %v654_v29 = vld [vmem:[%s935_s2] ss:$0 sm:$0xff] (!%p653_p11) }
  0x2d   : > { %695 = vmatpush3.bf16.msra.mxu0 %v754_v6 }
  0x2e   : > { %696 = vmatprep.subr.bf16.mxu0 %v755_v7 }
  0x31   : > { %697 = vmatpush3.bf16.msra.mxu0 %v755_v7 }
  0x32   : > { %698 = vmatprep.subr.bf16.mxu0 %v756_v8 }
  0x35   : > { %699 = vmatpush3.bf16.msra.mxu0 %v756_v8 }
  0x36   : > { %700 = vmatprep.subr.bf16.mxu0 %v757_v10 }
  0x39   : > { %701 = vmatpush3.bf16.msra.mxu0 %v757_v10 }
  0x3a   : > { %702 = vmatprep.subr.bf16.mxu0 %v758_v11 }
  0x3d   : > { %703 = vmatpush3.bf16.msra.mxu0 %v758_v11 }
  0x3e   : > { %704 = vmatprep.subr.bf16.mxu0 %v759_v12 }
  0x41   : > { %705 = vmatpush3.bf16.msra.mxu0 %v759_v12 }
  0x42   : > { %706 = vmatprep.subr.bf16.mxu0 %v760_v13 }
  0x45   : > { %707 = vmatpush3.bf16.msra.mxu0 %v760_v13 }
  0x48   : > { %709 = vmatmul.mubr.bf16.vlgmr.msra.gmra.mrb[0].mxu0 %v762_v14 }
 0x11b   : > { %v710_v17 = vpop.f32.mrb[0].mxu0  ;;  %458 = sbr.rel (%p653_p11) target bundleno = 332 (0x14c), region = 81 }
 0x11c   : > { %v449_v19 = vadd.f32 %v710_v17, %v316_v15  ;;  %v432_v20 = vpop.f32.mrb[1].mxu0 }
 0x11d   : > { %v447_v22 = vadd.f32 %v432_v20, %v314_v16  ;;  %v711_v23 = vpop.f32.mrb[2].mxu0 }
 0x11e   : > { %453 = vst [vmem:[#allocation2 + $0x10] sm:$0xff] %v449_v19  ;;  %v450_v24 = vadd.f32 %v711_v23, %v317_v18  ;;  %v435_v25 = vpop.f32.mrb[3].mxu0 }
 0x11f   : > { %451 = vst [vmem:[#allocation2] sm:$0xff] %v447_v22  ;;  %v448_v26 = vadd.f32 %v435_v25, %v315_v21 }
 0x120   : > { %454 = vst [vmem:[#allocation2 + $0x18] sm:$0xff] %v450_v24 }
 0x121   : > { %452 = vst [vmem:[#allocation2 + $0x8] sm:$0xff] %v448_v26 }
 0x125   : > { %v461_v32 = vld [vmem:[#allocation2 + $0x10] sm:$0xff] }
 0x126   : > { %v459_v27 = vld [vmem:[#allocation2] sm:$0xff]  ;;  %v472_v34 = vadd.f32 %v654_v29, %v461_v32 }
 0x127   : > { %v470_v30 = vadd.f32 %v654_v29, %v459_v27  ;;  %v462_v33 = vld [vmem:[#allocation2 + $0x18] sm:$0xff] }
 0x128   : > { %v460_v28 = vld [vmem:[#allocation2 + $0x8] sm:$0xff]  ;;  %v473_v35 = vadd.f32 %v654_v29, %v462_v33  ;;  %v657_v38 = vmul.f32 -1.442695, %v472_v34 }
 0x129   : > { %v471_v31 = vadd.f32 %v654_v29, %v460_v28  ;;  %v655_v36 = vmul.f32 -1.442695, %v470_v30 }
 0x12a   : > { %v658_v39 = vmul.f32 -1.442695, %v473_v35 }
 0x12b   : > { %v656_v37 = vmul.f32 -1.442695, %v471_v31  ;;  %763 = vpow2.f32 %v655_v36 }
 0x12d   : > { %765 = vpow2.f32 %v656_v37 }
 0x12e   : > { %767 = vpow2.f32 %v657_v38 }
 0x12f   : > { %769 = vpow2.f32 %v658_v39 }
 0x135   : > { %v764_v40 = vpop.eup %763 }
 0x136   : > { %v486_v42 = vadd.f32 1.0, %v764_v40 }
 0x137   : > { %v766_v41 = vpop.eup %765 }
 0x138   : > { %v768_v43 = vpop.eup %767  ;;  %v487_v44 = vadd.f32 1.0, %v766_v41  ;;  %771 = vrcp.f32 %v486_v42 }
 0x139   : > { %v770_v45 = vpop.eup %769  ;;  %v488_v46 = vadd.f32 1.0, %v768_v43 }
 0x13a   : > { %773 = vrcp.f32 %v487_v44  ;;  %v489_v47 = vadd.f32 1.0, %v770_v45 }
 0x13b   : > { %775 = vrcp.f32 %v488_v46 }
 0x13c   : > { %777 = vrcp.f32 %v489_v47 }
 0x142   : > { %v772_v48 = vpop.eup %771 }
 0x143   : > { %v498_v50 = vmul.f32 %v772_v48, %v470_v30 }
 0x144   : > { %v774_v49 = vpop.eup %773 }
 0x145   : > { %v776_v51 = vpop.eup %775  ;;  %v499_v52 = vmul.f32 %v774_v49, %v471_v31 }
 0x146   : > { %v778_v53 = vpop.eup %777  ;;  %v500_v54 = vmul.f32 %v776_v51, %v472_v34 }
 0x147   : > { %v674_v55 = vpack.c.bf16 %v499_v52, %v498_v50  ;;  %v501_v56 = vmul.f32 %v778_v53, %v473_v35 }
 0x149   : > { %675 = vst [vmem:[%s936_s3] sm:$0xff] %v674_v55   ;;  %v679_v57 = vpack.c.bf16 %v501_v56, %v500_v54 }
 0x14b   : > { %681 = vst [vmem:[%s936_s3 + $0x8] sm:$0xff] %v679_v57  }
 0x14c PF: > { %s13_s16 = sadd.s32 1, %s817_s16   ;;  %s937_s12 = smov %s805_s13 }
 0x14d   : > { %p10_p12 = scmp.ge.s32.totalorder %s13_s16, 11   ;;  %s938_s13 = smov %s875_s20 }
 0x14e   : > { %s939_s14 = smov %s813_s15  ;;  %s940_s15 = smov %s942_s17 }
 0x14f   :  { %12 = sbr.rel (!%p10_p12) target bundleno = 3 (0x3), region = 122 }

// kernel: _lambda_.13
= control target key start
LH: loop header
LB: loop body
LE: loop exit
PB: predicated region body
PF: predicated region fallthrough
CT: control target
= control target key end

     0   :  { %s945_s15 = smov 0   ;;  %s947_s16 = smov 0   ;;  %s1044_s0 = inlined_call_operand.vmem [shape: bf16[32,1152], index: 0, kind: input, shape index: {}]   ;;  %s1045_s1 = inlined_call_operand.vmem [shape: bf16[1152,128], index: 1, kind: input, shape index: {}]   ;;  %s1046_s2 = inlined_call_operand.vmem [shape: f32[1,128], index: 2, kind: input, shape index: {}]   ;;  %s1047_s3 = inlined_call_operand.vmem [shape: bf16[32,128], index: 3, kind: input, shape index: {}]   ;;  %s1048_s4 = inlined_call_operand.vmem [shape: bf16[32,128], index: 4, kind: output, shape index: {}]  }
   0x1   :  { %s949_s17 = smov 0   ;;  %s951_s18 = smov 0  }
   0x2   :  { %s953_s19 = smov 0  }
   0x3 LB: > { %s26_s20 = sadd.s32 1, %s913_s18  ;;  %p49_p1 = scmp.ne.s32.totalorder %s905_s16, %s901_s15  ;;  %s917_s19 = sphi %s953_s19, %s14_s19   ;;  %s913_s18 = sphi %s951_s18, %s1052_s18   ;;  %s909_s17 = sphi %s949_s17, %s1051_s17   ;;  %s905_s16 = sphi %s947_s16, %s1050_s16   ;;  %s901_s15 = sphi %s945_s15, %s1049_s15  }
   0x4   : > { %p27_p0 = scmp.ge.s32.totalorder %s26_s20, 9  ;;  %p50_p2 = scmp.eq.s32.totalorder %s917_s19, 0 }
   0x5   : > { %s42_s22 = sadd.s32 1, %s905_s16  ;;  %p726_p5 = scmp.ge.s32.totalorder %s917_s19, 9 }
   0x6   : > { %s1054_s20 = smov (%p27_p0, %s26_s20), 0  ;;  %p51_p3 = por %p50_p2, %p49_p1 }
   0x7   : > { %s38_s21 = ssub.s32 %s913_s18, %s1054_s20  ;;  %203 = sbr.rel (%p726_p5) target bundleno = 21 (0x15), region = 24 }
   0x8   : > { %p40_p4 = scmp.eq.s32.totalorder %s38_s21, 0 }
   0xa   : > { %s980_s23 = scalar_select %p40_p4, %s905_s16, %s42_s22  }
   0xe   : > { %206 = sbr.rel (!%p51_p3) target bundleno = 21 (0x15), region = 28  ;;  %s208_s24 = sand.u32 (%p51_p3), 1, %s905_s16  }
   0xf   : > { %s728_s25 = sshll.u32 (%p51_p3), %s913_s18, 2  ;;  %s727_s26 = sshll.u32 (%p51_p3), %s208_s24, 4 }
  0x10   : > { %s215_s29 = scalar_lea.vmem (%p51_p3), %s1044_s0, %s728_s25  ;;  %s210_s30 = scalar_lea.vmem (%p51_p3), [#allocation3], %s727_s26 }
  0x11   : > { %v231_v0 = vld [vmem:[%s215_s29] sm:$0xf] (%p51_p3)  ;;  %v233_v1 = vld [vmem:[%s215_s29 + $0x24] sm:$0xf] (%p51_p3)  ;;  %v235_v2 = vld [vmem:[%s215_s29 + $0x48] sm:$0xf] (%p51_p3) }
  0x12   : > { %232 = vst [vmem:[%s210_s30] sm:$0xf] (%p51_p3), %v231_v0  ;;  %234 = vst [vmem:[%s210_s30 + $0x4] sm:$0xf] (%p51_p3), %v233_v1  ;;  %v237_v3 = vld [vmem:[%s215_s29 + $0x6c] sm:$0xf] (%p51_p3) }
  0x13   : > { %236 = vst [vmem:[%s210_s30 + $0x8] sm:$0xf] (%p51_p3), %v235_v2  ;;  %238 = vst [vmem:[%s210_s30 + $0xc] sm:$0xf] (%p51_p3), %v237_v3 }
  0x15 PF: > { %p729_p6 = scmp.ge.s32.totalorder %s917_s19, 1  ;;  %p280_p7 = scmp.lt.s32.totalorder %s917_s19, 10 }
  0x17   : > { %p281_p8 = pnand %p729_p6, %p280_p7 }
  0x18   : > { %s287_s5 = sand.u32 (!%p281_p8), 1, %s901_s15   ;;  %s731_s6 = sshll.u32 (!%p281_p8), %s909_s17, 4 }
  0x19   : > { %284 = sbr.rel (%p281_p8) target bundleno = 334 (0x14e), region = 73  ;;  %s992_s7 = sshll.u32 (!%p281_p8), %s287_s5, 4 }
  0x1a   : > { %p336_p9 = scmp.lt.s32.totalorder (!%p281_p8), %s731_s6, 143  ;;  %s289_s12 = scalar_lea.vmem (!%p281_p8), [#allocation3], %s992_s7 }
  0x1b   : > { %p733_p10 = scmp.ne.s32.totalorder (!%p281_p8), %s909_s17, 0 }
  0x20   : > { %s1056_s6 = smov (!%p336_p9, %s731_s6), 143  ;;  %369 = sbr.rel (%p733_p10) target bundleno = 39 (0x27), region = 81 }
  0x21   : > { %s732_s8 = sshll.u32 %s1056_s6, 2  ;;  %v919_v4 = vmov (!%p733_p10), 0.0  }
  0x22   : > { %s997_s11 = scalar_lea.vmem %s1045_s1, %s732_s8  ;;  %370 = vst [vmem:[#allocation2] sm:$0xff] (!%p733_p10), %v919_v4  ;;  %371 = vst [vmem:[#allocation2 + $0x8] sm:$0xff] (!%p733_p10), %v919_v4 }
  0x23   : > { %372 = vst [vmem:[#allocation2 + $0x10] sm:$0xff] (!%p733_p10), %v919_v4  ;;  %373 = vst [vmem:[#allocation2 + $0x18] sm:$0xff] (!%p733_p10), %v919_v4 }
  0x27 PF: > { %v853_v5 = vld [vmem:[%s997_s11] sm:$0xff]   ;;  %v854_v6 = vld [vmem:[%s997_s11 + $0x8] sm:$0xff]   ;;  %v855_v7 = vld [vmem:[%s997_s11 + $0x10] sm:$0xff]   ;;  %p744_p11 = scmp.ne.s32.totalorder %s909_s17, 8 }
  0x28   : > { %792 = vmatprep.subr.bf16.mxu0 %v853_v5  ;;  %v856_v8 = vld [vmem:[%s997_s11 + $0x18] sm:$0xff]   ;;  %v861_v9 = vld [vmem:[%s289_s12] sm:$0xff]   ;;  %v858_v11 = vld [vmem:[%s997_s11 + $0x28] sm:$0xff]  }
  0x29   : > { %793 = vmatpush3.bf16.msra.mxu0 %v853_v5  ;;  %808 = vmatprep.mubr.bf16.mxu0 %v861_v9  ;;  %v857_v10 = vld [vmem:[%s997_s11 + $0x20] sm:$0xff]   ;;  %v859_v12 = vld [vmem:[%s997_s11 + $0x30] sm:$0xff]   ;;  %v860_v13 = vld [vmem:[%s997_s11 + $0x38] sm:$0xff]  }
  0x2a   : > { %794 = vmatprep.subr.bf16.mxu0 %v854_v6  ;;  %v862_v14 = vld [vmem:[%s289_s12 + $0x8] sm:$0xff]   ;;  %v376_v15 = vld [vmem:[#allocation2 + $0x10] sm:$0xff]  ;;  %v374_v16 = vld [vmem:[#allocation2] sm:$0xff] }
  0x2b   : > { %v377_v18 = vld [vmem:[#allocation2 + $0x18] sm:$0xff]  ;;  %v375_v21 = vld [vmem:[#allocation2 + $0x8] sm:$0xff]  ;;  %v745_v29 = vld [vmem:[%s1046_s2] ss:$0 sm:$0xff] (!%p744_p11) }
  0x2c   : > { %v763_v32 = vld [vmem:[%s1047_s3] sm:$0xff] (!%p744_p11)   ;;  %v780_v39 = vld [vmem:[%s1047_s3 + $0x8] sm:$0xff] (!%p744_p11)  }
  0x2d   : > { %795 = vmatpush3.bf16.msra.mxu0 %v854_v6  ;;  %v764_v35 = vunpack.c.l.bf16 (!%p744_p11), %v763_v32  ;;  %v765_v36 = vunpack.c.h.bf16 (!%p744_p11), %v763_v32  ;;  %v768_v40 = vunpack.c.l.bf16 (!%p744_p11), %v780_v39  ;;  %v769_v41 = vunpack.c.h.bf16 (!%p744_p11), %v780_v39 }
  0x2e   : > { %796 = vmatprep.subr.bf16.mxu0 %v855_v7 }
  0x31   : > { %797 = vmatpush3.bf16.msra.mxu0 %v855_v7 }
  0x32   : > { %798 = vmatprep.subr.bf16.mxu0 %v856_v8 }
  0x35   : > { %799 = vmatpush3.bf16.msra.mxu0 %v856_v8 }
  0x36   : > { %800 = vmatprep.subr.bf16.mxu0 %v857_v10 }
  0x39   : > { %801 = vmatpush3.bf16.msra.mxu0 %v857_v10 }
  0x3a   : > { %802 = vmatprep.subr.bf16.mxu0 %v858_v11 }
  0x3d   : > { %803 = vmatpush3.bf16.msra.mxu0 %v858_v11 }
  0x3e   : > { %804 = vmatprep.subr.bf16.mxu0 %v859_v12 }
  0x41   : > { %805 = vmatpush3.bf16.msra.mxu0 %v859_v12 }
  0x42   : > { %806 = vmatprep.subr.bf16.mxu0 %v860_v13 }
  0x45   : > { %807 = vmatpush3.bf16.msra.mxu0 %v860_v13 }
  0x48   : > { %809 = vmatmul.mubr.bf16.vlgmr.msra.gmra.mrb[0].mxu0 %v862_v14 }
 0x11b   : > { %v810_v17 = vpop.f32.mrb[0].mxu0  ;;  %518 = sbr.rel (%p744_p11) target bundleno = 334 (0x14e), region = 85 }
 0x11c   : > { %v509_v19 = vadd.f32 %v810_v17, %v376_v15  ;;  %v492_v20 = vpop.f32.mrb[1].mxu0 }
 0x11d   : > { %v507_v22 = vadd.f32 %v492_v20, %v374_v16  ;;  %v811_v23 = vpop.f32.mrb[2].mxu0 }
 0x11e   : > { %513 = vst [vmem:[#allocation2 + $0x10] sm:$0xff] %v509_v19  ;;  %v510_v24 = vadd.f32 %v811_v23, %v377_v18  ;;  %v495_v25 = vpop.f32.mrb[3].mxu0 }
 0x11f   : > { %511 = vst [vmem:[#allocation2] sm:$0xff] %v507_v22  ;;  %v508_v26 = vadd.f32 %v495_v25, %v375_v21 }
 0x120   : > { %514 = vst [vmem:[#allocation2 + $0x18] sm:$0xff] %v510_v24 }
 0x121   : > { %512 = vst [vmem:[#allocation2 + $0x8] sm:$0xff] %v508_v26 }
 0x125   : > { %v521_v33 = vld [vmem:[#allocation2 + $0x10] sm:$0xff] }
 0x126   : > { %v519_v27 = vld [vmem:[#allocation2] sm:$0xff]  ;;  %v532_v37 = vadd.f32 %v745_v29, %v521_v33 }
 0x127   : > { %v530_v30 = vadd.f32 %v745_v29, %v519_v27  ;;  %v522_v34 = vld [vmem:[#allocation2 + $0x18] sm:$0xff] }
 0x128   : > { %v520_v28 = vld [vmem:[#allocation2 + $0x8] sm:$0xff]  ;;  %v533_v38 = vadd.f32 %v745_v29, %v522_v34  ;;  %v544_v44 = vadd.f32 %v768_v40, %v532_v37 }
 0x129   : > { %v531_v31 = vadd.f32 %v745_v29, %v520_v28  ;;  %v542_v42 = vadd.f32 %v764_v35, %v530_v30 }
 0x12a   : > { %v545_v45 = vadd.f32 %v769_v41, %v533_v38  ;;  %v748_v48 = vmul.f32 -1.442695, %v544_v44 }
 0x12b   : > { %v543_v43 = vadd.f32 %v765_v36, %v531_v31  ;;  %v746_v46 = vmul.f32 -1.442695, %v542_v42 }
 0x12c   : > { %v749_v49 = vmul.f32 -1.442695, %v545_v45 }
 0x12d   : > { %v747_v47 = vmul.f32 -1.442695, %v543_v43  ;;  %863 = vpow2.f32 %v746_v46 }
 0x12f   : > { %865 = vpow2.f32 %v747_v47 }
 0x130   : > { %867 = vpow2.f32 %v748_v48 }
 0x131   : > { %869 = vpow2.f32 %v749_v49 }
 0x137   : > { %v864_v50 = vpop.eup %863 }
 0x138   : > { %v558_v52 = vadd.f32 1.0, %v864_v50 }
 0x139   : > { %v866_v51 = vpop.eup %865 }
 0x13a   : > { %v868_v53 = vpop.eup %867  ;;  %v559_v54 = vadd.f32 1.0, %v866_v51  ;;  %871 = vrcp.f32 %v558_v52 }
 0x13b   : > { %v870_v55 = vpop.eup %869  ;;  %v560_v56 = vadd.f32 1.0, %v868_v53 }
 0x13c   : > { %873 = vrcp.f32 %v559_v54  ;;  %v561_v57 = vadd.f32 1.0, %v870_v55 }
 0x13d   : > { %875 = vrcp.f32 %v560_v56 }
 0x13e   : > { %877 = vrcp.f32 %v561_v57 }
 0x144   : > { %v872_v58 = vpop.eup %871 }
 0x145   : > { %v570_v60 = vmul.f32 %v872_v58, %v542_v42 }
 0x146   : > { %v874_v59 = vpop.eup %873 }
 0x147   : > { %v876_v61 = vpop.eup %875  ;;  %v571_v62 = vmul.f32 %v874_v59, %v543_v43 }
 0x148   : > { %v878_v63 = vpop.eup %877  ;;  %v572_v0 = vmul.f32 %v876_v61, %v544_v44 }
 0x149   : > { %v773_v1 = vpack.c.bf16 %v571_v62, %v570_v60  ;;  %v573_v2 = vmul.f32 %v878_v63, %v545_v45 }
 0x14b   : > { %774 = vst [vmem:[%s1048_s4] sm:$0xff] %v773_v1   ;;  %v778_v3 = vpack.c.bf16 %v573_v2, %v572_v0 }
 0x14d   : > { %781 = vst [vmem:[%s1048_s4 + $0x8] sm:$0xff] %v778_v3  }
 0x14e PF: > { %s14_s19 = sadd.s32 1, %s917_s19   ;;  %s1049_s15 = smov %s905_s16 }
 0x14f   : > { %p11_p12 = scmp.ge.s32.totalorder %s14_s19, 11   ;;  %s1050_s16 = smov %s980_s23 }
 0x150   : > { %s1051_s17 = smov %s913_s18  ;;  %s1052_s18 = smov %s1054_s20 }
 0x151   :  { %13 = sbr.rel (!%p11_p12) target bundleno = 3 (0x3), region = 129 }

// kernel: _lambda_.14
= control target key start
LH: loop header
LB: loop body
LE: loop exit
PB: predicated region body
PF: predicated region fallthrough
CT: control target
= control target key end

     0   :  { %s69_s0 = inlined_call_operand.vmem [shape: bf16[8,128], index: 0, kind: input, shape index: {}]   ;;  %s70_s1 = inlined_call_operand.vmem [shape: bf16[8,128], index: 1, kind: input, shape index: {}]   ;;  %s71_s2 = inlined_call_operand.vmem [shape: bf16[8,128], index: 2, kind: input, shape index: {}]   ;;  %s72_s3 = inlined_call_operand.vmem [shape: bf16[8,128], index: 3, kind: input, shape index: {}]   ;;  %s73_s4 = inlined_call_operand.vmem [shape: bf16[8,128], index: 4, kind: output, shape index: {}]  }
   0x1   :  { %v17_v0 = vld [vmem:[%s69_s0] sm:$0xf] }
   0x2   :  { %v18_v1 = vld [vmem:[%s70_s1] sm:$0xf] }
   0x3   :  { %v20_v2 = vld [vmem:[%s71_s2] sm:$0xf]  ;;  %v19_v3 = vmax.bf16 %v18_v1, %v17_v0 }
   0x4   :  { %v21_v4 = vld [vmem:[%s72_s3] sm:$0xf] }
   0x5   :  { %v22_v5 = vmax.bf16 %v21_v4, %v20_v2 }
   0x7   :  { %v23_v6 = vmax.bf16 %v22_v5, %v19_v3 }
   0x9   :  { %24 = vst [vmem:[%s73_s4] sm:$0xf] %v23_v6 }

// kernel: _lambda_.15
= control target key start
LH: loop header
LB: loop body
LE: loop exit
PB: predicated region body
PF: predicated region fallthrough
CT: control target
= control target key end

     0   :  { %v194_v0 = vmov 0.0   ;;  %vm195_vm0 = vmmov 0   ;;  %s249_s1 = inlined_call_operand.vmem [shape: bf16[128,128], index: 1, kind: input, shape index: {}]   ;;  %s250_s0 = inlined_call_operand.vmem [shape: bf16[8,128], index: 0, kind: input, shape index: {}]   ;;  %s251_s2 = inlined_call_operand.vmem [shape: f32[1,128], index: 2, kind: input, shape index: {}]   ;;  %s252_s3 = inlined_call_operand.vmem [shape: bf16[8,128], index: 3, kind: output, shape index: {}]  }
   0x1   :  { %164 = vmatprep.subr.bf16.mxu0 %v194_v0  ;;  %v186_v1 = vld [vmem:[%s249_s1] sm:$0xff]   ;;  %180 = vmatprep.mubr.msk.bf16.mxu0 %vm195_vm0, %v194_v0  ;;  %v187_v2 = vld [vmem:[%s249_s1 + $0x8] sm:$0xff]   ;;  %v188_v3 = vld [vmem:[%s249_s1 + $0x10] sm:$0xff]  }
   0x2   :  { %165 = vmatpush3.bf16.msra.mxu0 %v186_v1  ;;  %v189_v4 = vld [vmem:[%s249_s1 + $0x18] sm:$0xff]   ;;  %v190_v5 = vld [vmem:[%s249_s1 + $0x20] sm:$0xff]   ;;  %v191_v6 = vld [vmem:[%s249_s1 + $0x28] sm:$0xff]  }
   0x3   :  { %166 = vmatprep.subr.bf16.mxu0 %v194_v0  ;;  %v192_v7 = vld [vmem:[%s249_s1 + $0x30] sm:$0xff]   ;;  %v193_v8 = vld [vmem:[%s249_s1 + $0x38] sm:$0xff]   ;;  %v21_v9 = vld [vmem:[%s250_s0] sm:$0xf] }
   0x4   :  { %v154_v10 = vld [vmem:[%s251_s2] ss:$0 sm:$0xff] }
   0x6   :  { %167 = vmatpush3.bf16.msra.mxu0 %v187_v2 }
   0x7   :  { %168 = vmatprep.subr.bf16.mxu0 %v194_v0 }
   0xa   :  { %169 = vmatpush3.bf16.msra.mxu0 %v188_v3 }
   0xb   :  { %170 = vmatprep.subr.bf16.mxu0 %v194_v0 }
   0xe   :  { %171 = vmatpush3.bf16.msra.mxu0 %v189_v4 }
   0xf   :  { %172 = vmatprep.subr.bf16.mxu0 %v194_v0 }
  0x12   :  { %173 = vmatpush3.bf16.msra.mxu0 %v190_v5 }
  0x13   :  { %174 = vmatprep.subr.bf16.mxu0 %v194_v0 }
  0x16   :  { %175 = vmatpush3.bf16.msra.mxu0 %v191_v6 }
  0x17   :  { %176 = vmatprep.subr.bf16.mxu0 %v194_v0 }
  0x1a   :  { %177 = vmatpush3.bf16.msra.mxu0 %v192_v7 }
  0x1b   :  { %178 = vmatprep.subr.bf16.mxu0 %v194_v0 }
  0x1e   :  { %179 = vmatpush3.bf16.msra.mxu0 %v193_v8 }
  0x21   :  { %181 = vmatmul.mubr.bf16.vlgmr.msra.gmra.mrb[0].mxu0 %v21_v9 }
  0xf4   :  { %v120_v11 = vpop.f32.mrb[0].mxu0 }
  0xf5   :  { %v139_v12 = vadd.f32 %v154_v10, %v120_v11  ;;  %v182_v13 = vpop.f32.mrb[1].mxu0 }
  0xf6   :  { %v123_v14 = vpop.f32.mrb[2].mxu0 }
  0xf7   :  { %v140_v15 = vpack.c.bf16 %v139_v12, %v139_v12  ;;  %v183_v16 = vpop.f32.mrb[3].mxu0 }
  0xf9   :  { %141 = vst [vmem:[%s252_s3] sm:$0xf] %v140_v15 }

// kernel: _lambda_.16
= control target key start
LH: loop header
LB: loop body
LE: loop exit
PB: predicated region body
PF: predicated region fallthrough
CT: control target
= control target key end

     0   :  { %s633_s12 = smov 0   ;;  %s635_s13 = smov 0   ;;  %s682_s0 = inlined_call_operand.vmem [shape: bf16[8,1152], index: 0, kind: input, shape index: {}]   ;;  %s683_s1 = inlined_call_operand.vmem [shape: bf16[1152,128], index: 1, kind: input, shape index: {}]   ;;  %s684_s2 = inlined_call_operand.vmem [shape: f32[1,128], index: 2, kind: input, shape index: {}]   ;;  %s685_s3 = inlined_call_operand.vmem [shape: bf16[8,128], index: 3, kind: output, shape index: {}]  }
   0x1   :  { %s637_s14 = smov 0  }
   0x2 LB: > { %s25_s15 = sadd.s32 1, %s604_s13  ;;  %p499_p0 = scmp.ge.s32.totalorder %s608_s14, 1  ;;  %s608_s14 = sphi %s637_s14, %s13_s14   ;;  %s604_s13 = sphi %s635_s13, %s687_s13   ;;  %s600_s12 = sphi %s633_s12, %s686_s12  }
   0x3   : > { %p26_p1 = scmp.ge.s32.totalorder %s25_s15, 9  ;;  %p187_p2 = scmp.lt.s32.totalorder %s608_s14, 10 }
   0x5   : > { %s689_s15 = smov (%p26_p1, %s25_s15), 0  ;;  %p188_p3 = pnand %p499_p0, %p187_p2 }
   0x6   : > { %p229_p4 = scmp.lt.s32.totalorder (!%p188_p3), %s600_s12, 8  ;;  %s501_s16 = sshll.u32 (!%p188_p3), %s600_s12, 4 }
   0x7   : > { %191 = sbr.rel (%p188_p3) target bundleno = 310 (0x136), region = 32  ;;  %p236_p5 = scmp.lt.s32.totalorder (!%p188_p3), %s501_s16, 143 }
   0x8   : > { %p503_p6 = scmp.ne.s32.totalorder (!%p188_p3), %s600_s12, 0 }
   0xe   : > { %s230_s17 = scalar_select %p229_p4, %s600_s12, 8 }
   0xf   : > { %s691_s16 = smov (!%p236_p5, %s501_s16), 143  ;;  %258 = sbr.rel (%p503_p6) target bundleno = 22 (0x16), region = 36 }
  0x10   : > { %s500_s18 = sshll.u32 %s230_s17, 2  ;;  %s502_s22 = sshll.u32 %s691_s16, 2  ;;  %v610_v0 = vmov (!%p503_p6), 0.0  }
  0x11   : > { %s659_s21 = scalar_lea.vmem %s682_s0, %s500_s18  ;;  %s242_s25 = scalar_lea.vmem %s683_s1, %s502_s22  ;;  %259 = vst [vmem:[#allocation2] sm:$0xff] (!%p503_p6), %v610_v0 }
  0x16 PF: > { %v574_v1 = vld [vmem:[%s242_s25] sm:$0xff]   ;;  %v611_v2 = vmov 0.0   ;;  %v575_v3 = vld [vmem:[%s242_s25 + $0x8] sm:$0xff]   ;;  %vm612_vm0 = vmmov 0   ;;  %v576_v4 = vld [vmem:[%s242_s25 + $0x10] sm:$0xff]   ;;  %p512_p7 = scmp.ne.s32.totalorder %s600_s12, 8 }
  0x17   : > { %527 = vmatprep.subr.bf16.mxu0 %v611_v2  ;;  %543 = vmatprep.mubr.msk.bf16.mxu0 %vm612_vm0, %v611_v2  ;;  %v577_v5 = vld [vmem:[%s242_s25 + $0x18] sm:$0xff]   ;;  %v578_v6 = vld [vmem:[%s242_s25 + $0x20] sm:$0xff]   ;;  %v579_v7 = vld [vmem:[%s242_s25 + $0x28] sm:$0xff]  }
  0x18   : > { %528 = vmatpush3.bf16.msra.mxu0 %v574_v1  ;;  %v580_v8 = vld [vmem:[%s242_s25 + $0x30] sm:$0xff]   ;;  %v581_v9 = vld [vmem:[%s242_s25 + $0x38] sm:$0xff]   ;;  %v261_v10 = vld [vmem:[%s659_s21] sm:$0xf] }
  0x19   : > { %529 = vmatprep.subr.bf16.mxu0 %v611_v2  ;;  %v260_v11 = vld [vmem:[#allocation2] sm:$0xff] }
  0x1a   : > { %v513_v18 = vld [vmem:[%s684_s2] ss:$0 sm:$0xff] (!%p512_p7) }
  0x1c   : > { %530 = vmatpush3.bf16.msra.mxu0 %v575_v3 }
  0x1d   : > { %531 = vmatprep.subr.bf16.mxu0 %v611_v2 }
  0x20   : > { %532 = vmatpush3.bf16.msra.mxu0 %v576_v4 }
  0x21   : > { %533 = vmatprep.subr.bf16.mxu0 %v611_v2 }
  0x24   : > { %534 = vmatpush3.bf16.msra.mxu0 %v577_v5 }
  0x25   : > { %535 = vmatprep.subr.bf16.mxu0 %v611_v2 }
  0x28   : > { %536 = vmatpush3.bf16.msra.mxu0 %v578_v6 }
  0x29   : > { %537 = vmatprep.subr.bf16.mxu0 %v611_v2 }
  0x2c   : > { %538 = vmatpush3.bf16.msra.mxu0 %v579_v7 }
  0x2d   : > { %539 = vmatprep.subr.bf16.mxu0 %v611_v2 }
  0x30   : > { %540 = vmatpush3.bf16.msra.mxu0 %v580_v8 }
  0x31   : > { %541 = vmatprep.subr.bf16.mxu0 %v611_v2 }
  0x34   : > { %542 = vmatpush3.bf16.msra.mxu0 %v581_v9 }
  0x37   : > { %544 = vmatmul.mubr.bf16.vlgmr.msra.gmra.mrb[0].mxu0 %v261_v10 }
 0x107   : > { %371 = sbr.rel (%p512_p7) target bundleno = 310 (0x136), region = 40 }
 0x10a   : > { %v360_v12 = vpop.f32.mrb[0].mxu0 }
 0x10b   : > { %v366_v13 = vadd.f32 %v360_v12, %v260_v11  ;;  %v545_v14 = vpop.f32.mrb[1].mxu0 }
 0x10c   : > { %v363_v15 = vpop.f32.mrb[2].mxu0 }
 0x10d   : > { %367 = vst [vmem:[#allocation2] sm:$0xff] %v366_v13  ;;  %v546_v16 = vpop.f32.mrb[3].mxu0 }
 0x114   : > { %v372_v17 = vld [vmem:[#allocation2] sm:$0xff] }
 0x115   : > { %v380_v19 = vadd.f32 %v513_v18, %v372_v17 }
 0x117   : > { %v514_v20 = vmul.f32 -1.442695, %v380_v19 }
 0x119   : > { %582 = vpow2.f32 %v514_v20 }
 0x123   : > { %v583_v21 = vpop.eup %582 }
 0x124   : > { %v384_v22 = vadd.f32 1.0, %v583_v21 }
 0x126   : > { %584 = vrcp.f32 %v384_v22 }
 0x130   : > { %v585_v23 = vpop.eup %584 }
 0x131   : > { %v387_v24 = vmul.f32 %v585_v23, %v380_v19 }
 0x133   : > { %v388_v25 = vpack.c.bf16 %v387_v24, %v387_v24 }
 0x135   : > { %389 = vst [vmem:[%s685_s3] sm:$0xf] %v388_v25 }
 0x136 PF: > { %s13_s14 = sadd.s32 1, %s608_s14   ;;  %s686_s12 = smov %s604_s13 }
 0x137   : > { %p10_p8 = scmp.ge.s32.totalorder %s13_s14, 11   ;;  %s687_s13 = smov %s689_s15 }
 0x139   :  { %12 = sbr.rel (!%p10_p8) target bundleno = 2 (0x2), region = 76 }

// kernel: _lambda_.17
= control target key start
LH: loop header
LB: loop body
LE: loop exit
PB: predicated region body
PF: predicated region fallthrough
CT: control target
= control target key end

     0   :  { %s715_s15 = smov 0   ;;  %s717_s16 = smov 0   ;;  %s767_s0 = inlined_call_operand.vmem [shape: bf16[8,1152], index: 0, kind: input, shape index: {}]   ;;  %s768_s1 = inlined_call_operand.vmem [shape: bf16[1152,128], index: 1, kind: input, shape index: {}]   ;;  %s769_s2 = inlined_call_operand.vmem [shape: f32[1,128], index: 2, kind: input, shape index: {}]   ;;  %s770_s3 = inlined_call_operand.vmem [shape: bf16[8,128], index: 3, kind: input, shape index: {}]   ;;  %s771_s4 = inlined_call_operand.vmem [shape: bf16[8,128], index: 4, kind: output, shape index: {}]  }
   0x1   :  { %s719_s17 = smov 0  }
   0x2 LB: > { %s26_s18 = sadd.s32 1, %s681_s16  ;;  %p576_p0 = scmp.ge.s32.totalorder %s685_s17, 1  ;;  %s685_s17 = sphi %s719_s17, %s14_s17   ;;  %s681_s16 = sphi %s717_s16, %s773_s16   ;;  %s677_s15 = sphi %s715_s15, %s772_s15  }
   0x3   : > { %p27_p1 = scmp.ge.s32.totalorder %s26_s18, 9  ;;  %p226_p2 = scmp.lt.s32.totalorder %s685_s17, 10 }
   0x5   : > { %s775_s18 = smov (%p27_p1, %s26_s18), 0  ;;  %p227_p3 = pnand %p576_p0, %p226_p2 }
   0x6   : > { %p277_p4 = scmp.lt.s32.totalorder (!%p227_p3), %s677_s15, 8  ;;  %s578_s19 = sshll.u32 (!%p227_p3), %s677_s15, 4 }
   0x7   : > { %230 = sbr.rel (%p227_p3) target bundleno = 312 (0x138), region = 36  ;;  %p284_p5 = scmp.lt.s32.totalorder (!%p227_p3), %s578_s19, 143 }
   0x8   : > { %p580_p6 = scmp.ne.s32.totalorder (!%p227_p3), %s677_s15, 0 }
   0xe   : > { %s278_s20 = scalar_select %p277_p4, %s677_s15, 8 }
   0xf   : > { %s777_s19 = smov (!%p284_p5, %s578_s19), 143  ;;  %313 = sbr.rel (%p580_p6) target bundleno = 22 (0x16), region = 40 }
  0x10   : > { %s577_s21 = sshll.u32 %s278_s20, 2  ;;  %s579_s25 = sshll.u32 %s777_s19, 2  ;;  %v687_v0 = vmov (!%p580_p6), 0.0  }
  0x11   : > { %s741_s24 = scalar_lea.vmem %s767_s0, %s577_s21  ;;  %s290_s28 = scalar_lea.vmem %s768_s1, %s579_s25  ;;  %314 = vst [vmem:[#allocation2] sm:$0xff] (!%p580_p6), %v687_v0 }
  0x16 PF: > { %v651_v1 = vld [vmem:[%s290_s28] sm:$0xff]   ;;  %v688_v2 = vmov 0.0   ;;  %v652_v3 = vld [vmem:[%s290_s28 + $0x8] sm:$0xff]   ;;  %vm689_vm0 = vmmov 0   ;;  %v653_v4 = vld [vmem:[%s290_s28 + $0x10] sm:$0xff]   ;;  %p589_p7 = scmp.ne.s32.totalorder %s677_s15, 8 }
  0x17   : > { %604 = vmatprep.subr.bf16.mxu0 %v688_v2  ;;  %620 = vmatprep.mubr.msk.bf16.mxu0 %vm689_vm0, %v688_v2  ;;  %v654_v5 = vld [vmem:[%s290_s28 + $0x18] sm:$0xff]   ;;  %v655_v6 = vld [vmem:[%s290_s28 + $0x20] sm:$0xff]   ;;  %v656_v7 = vld [vmem:[%s290_s28 + $0x28] sm:$0xff]  }
  0x18   : > { %605 = vmatpush3.bf16.msra.mxu0 %v651_v1  ;;  %v657_v8 = vld [vmem:[%s290_s28 + $0x30] sm:$0xff]   ;;  %v658_v9 = vld [vmem:[%s290_s28 + $0x38] sm:$0xff]   ;;  %v316_v10 = vld [vmem:[%s741_s24] sm:$0xf] }
  0x19   : > { %606 = vmatprep.subr.bf16.mxu0 %v688_v2  ;;  %v315_v11 = vld [vmem:[#allocation2] sm:$0xff] }
  0x1a   : > { %v590_v18 = vld [vmem:[%s769_s2] ss:$0 sm:$0xff] (!%p589_p7) }
  0x1b   : > { %v436_v19 = vld [vmem:[%s770_s3] sm:$0xf] (!%p589_p7) }
  0x1c   : > { %607 = vmatpush3.bf16.msra.mxu0 %v652_v3  ;;  %v437_v21 = vunpack.c.l.bf16 (!%p589_p7), %v436_v19 }
  0x1d   : > { %608 = vmatprep.subr.bf16.mxu0 %v688_v2 }
  0x20   : > { %609 = vmatpush3.bf16.msra.mxu0 %v653_v4 }
  0x21   : > { %610 = vmatprep.subr.bf16.mxu0 %v688_v2 }
  0x24   : > { %611 = vmatpush3.bf16.msra.mxu0 %v654_v5 }
  0x25   : > { %612 = vmatprep.subr.bf16.mxu0 %v688_v2 }
  0x28   : > { %613 = vmatpush3.bf16.msra.mxu0 %v655_v6 }
  0x29   : > { %614 = vmatprep.subr.bf16.mxu0 %v688_v2 }
  0x2c   : > { %615 = vmatpush3.bf16.msra.mxu0 %v656_v7 }
  0x2d   : > { %616 = vmatprep.subr.bf16.mxu0 %v688_v2 }
  0x30   : > { %617 = vmatpush3.bf16.msra.mxu0 %v657_v8 }
  0x31   : > { %618 = vmatprep.subr.bf16.mxu0 %v688_v2 }
  0x34   : > { %619 = vmatpush3.bf16.msra.mxu0 %v658_v9 }
  0x37   : > { %621 = vmatmul.mubr.bf16.vlgmr.msra.gmra.mrb[0].mxu0 %v316_v10 }
 0x107   : > { %426 = sbr.rel (%p589_p7) target bundleno = 312 (0x138), region = 44 }
 0x10a   : > { %v415_v12 = vpop.f32.mrb[0].mxu0 }
 0x10b   : > { %v421_v13 = vadd.f32 %v415_v12, %v315_v11  ;;  %v622_v14 = vpop.f32.mrb[1].mxu0 }
 0x10c   : > { %v418_v15 = vpop.f32.mrb[2].mxu0 }
 0x10d   : > { %422 = vst [vmem:[#allocation2] sm:$0xff] %v421_v13  ;;  %v623_v16 = vpop.f32.mrb[3].mxu0 }
 0x114   : > { %v427_v17 = vld [vmem:[#allocation2] sm:$0xff] }
 0x115   : > { %v435_v20 = vadd.f32 %v590_v18, %v427_v17 }
 0x117   : > { %v438_v22 = vadd.f32 %v437_v21, %v435_v20 }
 0x119   : > { %v591_v23 = vmul.f32 -1.442695, %v438_v22 }
 0x11b   : > { %659 = vpow2.f32 %v591_v23 }
 0x125   : > { %v660_v24 = vpop.eup %659 }
 0x126   : > { %v442_v25 = vadd.f32 1.0, %v660_v24 }
 0x128   : > { %661 = vrcp.f32 %v442_v25 }
 0x132   : > { %v662_v26 = vpop.eup %661 }
 0x133   : > { %v445_v27 = vmul.f32 %v662_v26, %v438_v22 }
 0x135   : > { %v446_v28 = vpack.c.bf16 %v445_v27, %v445_v27 }
 0x137   : > { %447 = vst [vmem:[%s771_s4] sm:$0xf] %v446_v28 }
 0x138 PF: > { %s14_s17 = sadd.s32 1, %s685_s17   ;;  %s772_s15 = smov %s681_s16 }
 0x139   : > { %p11_p8 = scmp.ge.s32.totalorder %s14_s17, 11   ;;  %s773_s16 = smov %s775_s18 }
 0x13b   :  { %13 = sbr.rel (!%p11_p8) target bundleno = 2 (0x2), region = 83 }

</bundles_post_ra>
